<compile_context>
chip_gen: v6e
topology: v6e:2x2x1
jax: 0.10.0
libtpu: 0.0.40
codegen_flags: <defaults>
</compile_context>

<pallas_src>
import functools

import numpy as np
import jax
import jax.numpy as jnp
from jax.experimental import pallas as pl
from jax.experimental.pallas import tpu as pltpu


def _round_up(x, m):
    return ((x + m - 1) // m) * m


def deepfm_kernel(idx_ref, tg_ref, rhs2_ref, w2_ref, b2_ref, w3_ref, b3_ref,
                  wd_ref, out_ref, *, num_fields):
    """Transposed DeepFM forward: batch runs along lanes everywhere.

    idx_ref : (F, Bt) int32   field indices (already offset into global vocab)
    tg_ref  : (NE, Vp) f32    gather table^T; rows 0..FE-1 field embeddings,
                              row FE = w_lr-scaled linear table, row FE+1 = 1/F
    rhs2_ref: (NE+128, NE)    [0.5*M | lr/bias pass-through | W1+b1]^T fused
    w2_ref  : (128, 128)      W2^T zero-padded
    b2_ref  : (128, 1)
    w3_ref  : (128, 128)      W3^T zero-padded
    b3_ref  : (128, 1)
    wd_ref  : (128, 1)        fc weights for the deep branch, zero-padded
    out_ref : (1, Bt)         sigmoid(logit), lane-dense
    """
    f32 = jnp.float32
    ne = tg_ref.shape[0]
    vpad = tg_ref.shape[1]
    bt = idx_ref.shape[1]

    # ---- one-hot gather mask (bool OR accumulate, cast once) ----
    idx = idx_ref[...]                                            # (F, Bt) int32
    iota = jax.lax.broadcasted_iota(jnp.int32, (vpad, bt), 0)     # vocab on sublanes
    mask = iota == idx[0:1, :]
    for f in range(1, num_fields):                                # static, tiny
        mask = jnp.logical_or(mask, iota == idx[f:f + 1, :])
    onehot = mask.astype(f32)                                     # (Vp, Bt)

    # ---- fused gather: embeddings + scaled LR + constant-1 lane ----
    x_full = jnp.dot(tg_ref[...], onehot, preferred_element_type=f32)   # (NE, Bt)

    # ---- fused [0.5*M | passthrough | W1,b1] matmul ----
    y = jnp.dot(rhs2_ref[...], x_full, preferred_element_type=f32)      # (NE+128, Bt)

    # rows 0..FE-1: 0.5 * (M x); row FE: 1; row FE+1: fc bias; rest 0
    p = x_full * y[:ne, :]            # per-row: x*0.5*Mx, lr, bfc, 0...   (NE, Bt)

    # ---- deep MLP (layer-1 bias already folded into the fused matmul) ----
    h = jnp.maximum(y[ne:, :], 0.0)                                      # (128, Bt)
    h = jnp.maximum(jnp.dot(w2_ref[...], h, preferred_element_type=f32)
                    + b2_ref[...], 0.0)
    h = jnp.maximum(jnp.dot(w3_ref[...], h, preferred_element_type=f32)
                    + b3_ref[...], 0.0)                                  # (128, Bt)
    contrib = h * wd_ref[...]                                            # (128, Bt)

    # ---- single sublane reduction -> lane-dense (1, Bt) logit ----
    if p.shape[0] == contrib.shape[0]:
        logit = jnp.sum(p + contrib, axis=0, keepdims=True)
    else:
        logit = (jnp.sum(p, axis=0, keepdims=True)
                 + jnp.sum(contrib, axis=0, keepdims=True))
    out_ref[...] = jax.nn.sigmoid(logit)


def pack_deepfm_params(params, feature_nums, emb_dims):
    """One-time host-side repack of the params into kernel-friendly layouts."""
    F = len(feature_nums)
    E = emb_dims
    FE = F * E
    P = F * (F - 1) // 2
    V = int(np.sum(feature_nums))
    Vp = _round_up(V, 128)
    NE = _round_up(FE + 2, 128)     # embeddings | lr | const-1, lane-padded
    HPAD = 128
    d1, d2, d3 = 128, 64, 32

    wfc = np.asarray(params["wfc"])            # rows: [lr (1), fm (P), deep (32)]
    w_lr = float(wfc[0, 0])
    w_fm = wfc[1:1 + P, 0]
    w_deep = wfc[1 + P:, 0]                    # (32,)
    bfc = float(np.asarray(params["bfc"])[0, 0])

    emb = np.asarray(params["emb_table"], np.float32)      # (V, E)
    lin = np.asarray(params["lin_table"], np.float32)[:, 0]  # (V,)

    # Expanded gather table (field-expanded embeddings + folded LR + const 1/F).
    field_of_v = np.repeat(np.arange(F), feature_nums)     # (V,)
    tg = np.zeros((Vp, NE), np.float32)
    for f in range(F):
        rows = np.where(field_of_v == f)[0]
        tg[rows, f * E:(f + 1) * E] = emb[rows]
    tg[:V, FE] = w_lr * lin
    tg[:V, FE + 1] = 1.0 / F
    tgT = jnp.asarray(tg.T)                                 # (NE, Vp)

    # FM quadratic form M = kron(W_sym, I_E), zero diagonal.
    W = np.zeros((F, F), np.float32)
    p = 0
    for i in range(F):
        for j in range(i + 1, F):
            W[i, j] = w_fm[p]
            W[j, i] = w_fm[p]
            p += 1
    M = np.kron(W, np.eye(E, dtype=np.float32))             # (FE, FE)

    # Fused RHS: group A = [0.5*M | lr passthrough | fc-bias], group B = W1 (+b1).
    w1 = np.asarray(params["w1"], np.float32)               # (FE, 128)
    b1 = np.asarray(params["b1"], np.float32)[0]            # (128,)
    N2 = NE + HPAD
    rhs2 = np.zeros((NE, N2), np.float32)
    rhs2[:FE, :FE] = 0.5 * M
    rhs2[FE + 1, FE] = 1.0          # passes LR through: p[FE] = lr * 1
    rhs2[FE + 1, FE + 1] = bfc      # p[FE+1] = 1 * bfc
    rhs2[:FE, NE:NE + d1] = w1
    rhs2[FE + 1, NE:NE + d1] = b1   # layer-1 bias via the constant-1 lane
    rhs2T = jnp.asarray(rhs2.T)                              # (NE+128, NE)

    # MLP layers 2/3 (transposed, zero-padded to 128 — exact under ReLU).
    w2T = np.zeros((HPAD, HPAD), np.float32)
    w2T[:d2, :d1] = np.asarray(params["w2"], np.float32).T
    b2c = np.zeros((HPAD, 1), np.float32)
    b2c[:d2, 0] = np.asarray(params["b2"], np.float32)[0]
    w3T = np.zeros((HPAD, HPAD), np.float32)
    w3T[:d3, :d2] = np.asarray(params["w3"], np.float32).T
    b3c = np.zeros((HPAD, 1), np.float32)
    b3c[:d3, 0] = np.asarray(params["b3"], np.float32)[0]
    wdc = np.zeros((HPAD, 1), np.float32)
    wdc[:d3, 0] = w_deep

    return (tgT, rhs2T, jnp.asarray(w2T), jnp.asarray(b2c),
            jnp.asarray(w3T), jnp.asarray(b3c), jnp.asarray(wdc))


def deepfm_forward(x, params, feature_nums, emb_dims):
    B, F = x.shape
    packed = pack_deepfm_params(params, feature_nums, emb_dims)

    offsets = jnp.asarray(
        np.concatenate([[0], np.cumsum(feature_nums)[:-1]]).astype(np.int32))
    idx_t = x.astype(jnp.int32).T + offsets[:, None]              # (F, B)

    # Batch tiling (batch lives on the lane axis): big lane-dense tiles for
    # large batches, a single 128-padded tile for small ones; grid kept >= 2
    # for large batches so v7x megacore splits the work.
    if B >= 2048:
        b_tile = 1024
    elif B >= 1024:
        b_tile = 512
    else:
        b_tile = _round_up(B, 128)
    b_pad = _round_up(B, b_tile)
    if b_pad != B:
        idx_t = jnp.pad(idx_t, ((0, 0), (0, b_pad - B)))
    grid = (b_pad // b_tile,)

    weight_specs = [pl.BlockSpec(w.shape, lambda i: (0, 0)) for w in packed]
    in_specs = [pl.BlockSpec((F, b_tile), lambda i: (0, i))] + weight_specs
    out_specs = pl.BlockSpec((1, b_tile), lambda i: (0, i))

    kernel = functools.partial(deepfm_kernel, num_fields=F)
    out = pl.pallas_call(
        kernel,
        out_shape=jax.ShapeDtypeStruct((1, b_pad), jnp.float32),
        grid=grid,
        in_specs=in_specs,
        out_specs=out_specs,
        compiler_params=pltpu.CompilerParams(
            dimension_semantics=("parallel",),
            vmem_limit_bytes=32 * 1024 * 1024),
    )(idx_t, *packed)
    return out[0, :B].reshape(B, 1)


def init_params(key, feature_nums, emb_dims):
    F = len(feature_nums)
    E = emb_dims
    vocab = int(np.sum(feature_nums))
    P = F * (F - 1) // 2
    dims = [E * F, 128, 64, 32]

    keys = jax.random.split(key, 10)
    params = {
        "lin_table": 0.1 * jax.random.normal(keys[0], (vocab, 1), jnp.float32),
        "emb_table": 0.1 * jax.random.normal(keys[1], (vocab, E), jnp.float32),
        "w1": 0.1 * jax.random.normal(keys[2], (dims[0], dims[1]), jnp.float32),
        "b1": 0.01 * jax.random.normal(keys[3], (1, dims[1]), jnp.float32),
        "w2": 0.1 * jax.random.normal(keys[4], (dims[1], dims[2]), jnp.float32),
        "b2": 0.01 * jax.random.normal(keys[5], (1, dims[2]), jnp.float32),
        "w3": 0.1 * jax.random.normal(keys[6], (dims[2], dims[3]), jnp.float32),
        "b3": 0.01 * jax.random.normal(keys[7], (1, dims[3]), jnp.float32),
        # fc: Linear(1 + P + 32, 1), rows ordered as [lr, fm-pairs, deep]
        "wfc": 0.1 * jax.random.normal(keys[8], (1 + P + 32, 1), jnp.float32),
        "bfc": 0.01 * jax.random.normal(keys[9], (1, 1), jnp.float32),
    }
    return params


def deepfm_reference(x, params, feature_nums, emb_dims):
    """Plain-JAX mirror of the original PyTorch forward (for validation)."""
    B, F = x.shape
    E = emb_dims
    offsets = jnp.asarray(
        np.concatenate([[0], np.cumsum(feature_nums)[:-1]]).astype(np.int32))
    idx = x + offsets[None, :]
    lr = params["lin_table"][idx][..., 0]                         # (B, F)
    emb = params["emb_table"][idx]                                # (B, F, E)
    fm_cols = []
    for i in range(F):
        for j in range(i + 1, F):
            fm_cols.append(
                jnp.sum(emb[:, i, :] * emb[:, j, :], axis=-1, keepdims=True))
    fm = jnp.concatenate(fm_cols, axis=-1)                        # (B, P)
    h = emb.reshape(B, F * E)
    h = jnp.maximum(h @ params["w1"] + params["b1"], 0.0)
    h = jnp.maximum(h @ params["w2"] + params["b2"], 0.0)
    h = jnp.maximum(h @ params["w3"] + params["b3"], 0.0)
    stacked = jnp.concatenate(
        [jnp.sum(lr, axis=1, keepdims=True), fm, h], axis=-1)
    return jax.nn.sigmoid(stacked @ params["wfc"] + params["bfc"])


def _make_inputs(key, batch, feature_nums):
    cols = []
    ks = jax.random.split(key, len(feature_nums))
    for f, n in enumerate(feature_nums):
        cols.append(jax.random.randint(ks[f], (batch, 1), 0, n, dtype=jnp.int32))
    return jnp.concatenate(cols, axis=1)          # (B, F) int32


if __name__ == "__main__":
    feature_nums = [10, 20, 30, 40]   # 4 fields
    emb_dims = 8

    key = jax.random.PRNGKey(0)
    k_param, k_x1, k_x2 = jax.random.split(key, 3)
    params = init_params(k_param, feature_nums, emb_dims)

    # Small-batch test (single tile).
    x_small = _make_inputs(k_x1, 8, feature_nums)
    out_small = jax.block_until_ready(
        deepfm_forward(x_small, params, feature_nums, emb_dims))
    ref_small = deepfm_reference(x_small, params, feature_nums, emb_dims)
    assert out_small.shape == (8, 1)
    assert bool(jnp.all(jnp.isfinite(out_small)))
    assert bool(jnp.allclose(out_small, ref_small, atol=1e-4, rtol=1e-4))

    # Multi-tile test (exercises the batch grid / padding path).
    x_big = _make_inputs(k_x2, 1500, feature_nums)
    out_big = jax.block_until_ready(
        deepfm_forward(x_big, params, feature_nums, emb_dims))
    ref_big = deepfm_reference(x_big, params, feature_nums, emb_dims)
    assert out_big.shape == (1500, 1)
    assert bool(jnp.all(jnp.isfinite(out_big)))
    assert bool(jnp.allclose(out_big, ref_big, atol=1e-4, rtol=1e-4))

    print("KERNEL_OK")
</pallas_src>

<mosaic_0001>
module attributes {stable_mosaic.version = 11 : i64} {
  func.func @deepfm_kernel(%arg0: i32, %arg1: memref<4x128xi32, #tpu.memory_space<vmem>>, %arg2: memref<128x128xf32, #tpu.memory_space<vmem>>, %arg3: memref<256x128xf32, #tpu.memory_space<vmem>>, %arg4: memref<128x128xf32, #tpu.memory_space<vmem>>, %arg5: memref<128x1xf32, #tpu.memory_space<vmem>>, %arg6: memref<128x128xf32, #tpu.memory_space<vmem>>, %arg7: memref<128x1xf32, #tpu.memory_space<vmem>>, %arg8: memref<128x1xf32, #tpu.memory_space<vmem>>, %arg9: memref<1x128xf32, #tpu.memory_space<vmem>>) attributes {dimension_semantics = [#tpu.dimension_semantics<parallel>], iteration_bounds = array<i64: 1>, scalar_prefetch = 0 : i64, scratch_operands = 0 : i64, tpu.core_type = #tpu.core_type<tc>, window_params = [{transform_indices = @transform_0, window_bounds = array<i64: 4, 128>}, {pipeline_mode = #tpu.pipeline_mode<synchronous>, transform_indices = @transform_1, window_bounds = array<i64: 128, 128>}, {pipeline_mode = #tpu.pipeline_mode<synchronous>, transform_indices = @transform_2, window_bounds = array<i64: 256, 128>}, {pipeline_mode = #tpu.pipeline_mode<synchronous>, transform_indices = @transform_3, window_bounds = array<i64: 128, 128>}, {pipeline_mode = #tpu.pipeline_mode<synchronous>, transform_indices = @transform_4, window_bounds = array<i64: 128, 1>}, {pipeline_mode = #tpu.pipeline_mode<synchronous>, transform_indices = @transform_5, window_bounds = array<i64: 128, 128>}, {pipeline_mode = #tpu.pipeline_mode<synchronous>, transform_indices = @transform_6, window_bounds = array<i64: 128, 1>}, {pipeline_mode = #tpu.pipeline_mode<synchronous>, transform_indices = @transform_7, window_bounds = array<i64: 128, 1>}, {transform_indices = @transform_8, window_bounds = array<i64: 1, 128>}]} {
    %c0 = arith.constant 0 : index
    %c0_0 = arith.constant 0 : index
    %0 = vector.load %arg1[%c0, %c0_0] : memref<4x128xi32, #tpu.memory_space<vmem>>, vector<4x128xi32>
    %1 = tpu.iota {dimensions = array<i32: 0>} : vector<128x128xi32>
    %2 = vector.extract_strided_slice %0 {offsets = [0, 0], sizes = [1, 128], strides = [1, 1]} : vector<4x128xi32> to vector<1x128xi32>
    %3 = vector.broadcast %2 : vector<1x128xi32> to vector<128x128xi32>
    %4 = arith.cmpi eq, %1, %3 : vector<128x128xi32>
    %5 = vector.extract_strided_slice %0 {offsets = [1, 0], sizes = [1, 128], strides = [1, 1]} : vector<4x128xi32> to vector<1x128xi32>
    %6 = vector.broadcast %5 : vector<1x128xi32> to vector<128x128xi32>
    %7 = arith.cmpi eq, %1, %6 : vector<128x128xi32>
    %8 = arith.ori %4, %7 : vector<128x128xi1>
    %9 = vector.extract_strided_slice %0 {offsets = [2, 0], sizes = [1, 128], strides = [1, 1]} : vector<4x128xi32> to vector<1x128xi32>
    %10 = vector.broadcast %9 : vector<1x128xi32> to vector<128x128xi32>
    %11 = arith.cmpi eq, %1, %10 : vector<128x128xi32>
    %12 = arith.ori %8, %11 : vector<128x128xi1>
    %13 = vector.extract_strided_slice %0 {offsets = [3, 0], sizes = [1, 128], strides = [1, 1]} : vector<4x128xi32> to vector<1x128xi32>
    %14 = vector.broadcast %13 : vector<1x128xi32> to vector<128x128xi32>
    %15 = arith.cmpi eq, %1, %14 : vector<128x128xi32>
    %16 = arith.ori %12, %15 : vector<128x128xi1>
    %17 = arith.extui %16 : vector<128x128xi1> to vector<128x128xi32>
    %18 = arith.sitofp %17 : vector<128x128xi32> to vector<128x128xf32>
    %c0_1 = arith.constant 0 : index
    %c0_2 = arith.constant 0 : index
    %19 = vector.load %arg2[%c0_1, %c0_2] : memref<128x128xf32, #tpu.memory_space<vmem>>, vector<128x128xf32>
    %cst = arith.constant dense<0.000000e+00> : vector<128x128xf32>
    %20 = tpu.matmul %19, %18, %cst {dimension_numbers = #tpu.dot_dimension_numbers<[1], [0], [0], [1], [0, 0, 1, 1], [], []>} : vector<128x128xf32>, vector<128x128xf32>, vector<128x128xf32> -> vector<128x128xf32>
    %c0_3 = arith.constant 0 : index
    %c0_4 = arith.constant 0 : index
    %21 = vector.load %arg3[%c0_3, %c0_4] : memref<256x128xf32, #tpu.memory_space<vmem>>, vector<256x128xf32>
    %cst_5 = arith.constant dense<0.000000e+00> : vector<256x128xf32>
    %22 = tpu.matmul %21, %20, %cst_5 {dimension_numbers = #tpu.dot_dimension_numbers<[1], [0], [0], [1], [0, 0, 1, 1], [], []>} : vector<256x128xf32>, vector<128x128xf32>, vector<256x128xf32> -> vector<256x128xf32>
    %23 = vector.extract_strided_slice %22 {offsets = [0, 0], sizes = [128, 128], strides = [1, 1]} : vector<256x128xf32> to vector<128x128xf32>
    %24 = arith.mulf %20, %23 : vector<128x128xf32>
    %25 = vector.extract_strided_slice %22 {offsets = [128, 0], sizes = [128, 128], strides = [1, 1]} : vector<256x128xf32> to vector<128x128xf32>
    %cst_6 = arith.constant 0.000000e+00 : f32
    %26 = vector.broadcast %cst_6 : f32 to vector<128x128xf32>
    %27 = arith.maximumf %25, %26 : vector<128x128xf32>
    %c0_7 = arith.constant 0 : index
    %c0_8 = arith.constant 0 : index
    %28 = vector.load %arg4[%c0_7, %c0_8] : memref<128x128xf32, #tpu.memory_space<vmem>>, vector<128x128xf32>
    %cst_9 = arith.constant dense<0.000000e+00> : vector<128x128xf32>
    %29 = tpu.matmul %28, %27, %cst_9 {dimension_numbers = #tpu.dot_dimension_numbers<[1], [0], [0], [1], [0, 0, 1, 1], [], []>} : vector<128x128xf32>, vector<128x128xf32>, vector<128x128xf32> -> vector<128x128xf32>
    %c0_10 = arith.constant 0 : index
    %c0_11 = arith.constant 0 : index
    %30 = vector.load %arg5[%c0_10, %c0_11] : memref<128x1xf32, #tpu.memory_space<vmem>>, vector<128x1xf32>
    %31 = vector.broadcast %30 : vector<128x1xf32> to vector<128x128xf32>
    %32 = arith.addf %29, %31 : vector<128x128xf32>
    %cst_12 = arith.constant 0.000000e+00 : f32
    %33 = vector.broadcast %cst_12 : f32 to vector<128x128xf32>
    %34 = arith.maximumf %32, %33 : vector<128x128xf32>
    %c0_13 = arith.constant 0 : index
    %c0_14 = arith.constant 0 : index
    %35 = vector.load %arg6[%c0_13, %c0_14] : memref<128x128xf32, #tpu.memory_space<vmem>>, vector<128x128xf32>
    %cst_15 = arith.constant dense<0.000000e+00> : vector<128x128xf32>
    %36 = tpu.matmul %35, %34, %cst_15 {dimension_numbers = #tpu.dot_dimension_numbers<[1], [0], [0], [1], [0, 0, 1, 1], [], []>} : vector<128x128xf32>, vector<128x128xf32>, vector<128x128xf32> -> vector<128x128xf32>
    %c0_16 = arith.constant 0 : index
    %c0_17 = arith.constant 0 : index
    %37 = vector.load %arg7[%c0_16, %c0_17] : memref<128x1xf32, #tpu.memory_space<vmem>>, vector<128x1xf32>
    %38 = vector.broadcast %37 : vector<128x1xf32> to vector<128x128xf32>
    %39 = arith.addf %36, %38 : vector<128x128xf32>
    %cst_18 = arith.constant 0.000000e+00 : f32
    %40 = vector.broadcast %cst_18 : f32 to vector<128x128xf32>
    %41 = arith.maximumf %39, %40 : vector<128x128xf32>
    %c0_19 = arith.constant 0 : index
    %c0_20 = arith.constant 0 : index
    %42 = vector.load %arg8[%c0_19, %c0_20] : memref<128x1xf32, #tpu.memory_space<vmem>>, vector<128x1xf32>
    %43 = vector.broadcast %42 : vector<128x1xf32> to vector<128x128xf32>
    %44 = arith.mulf %41, %43 : vector<128x128xf32>
    %45 = arith.addf %24, %44 : vector<128x128xf32>
    %cst_21 = arith.constant dense<0.000000e+00> : vector<128xf32>
    %46 = vector.multi_reduction <add>, %45, %cst_21 [0] : vector<128x128xf32> to vector<128xf32>
    %47 = vector.shape_cast %46 : vector<128xf32> to vector<1x128xf32>
    %48 = arith.negf %47 : vector<1x128xf32>
    %49 = math.exp %48 : vector<1x128xf32>
    %cst_22 = arith.constant 1.000000e+00 : f32
    %50 = vector.broadcast %cst_22 : f32 to vector<1x128xf32>
    %51 = arith.addf %50, %49 : vector<1x128xf32>
    %52 = arith.divf %50, %51 : vector<1x128xf32>
    %c0_23 = arith.constant 0 : index
    %c0_24 = arith.constant 0 : index
    %53 = vector.load %arg9[%c0_23, %c0_24] : memref<1x128xf32, #tpu.memory_space<vmem>>, vector<1x128xf32>
    tpu.vector_store %arg9[%c0_23, %c0_24], %52 {strides = array<i32>} : memref<1x128xf32, #tpu.memory_space<vmem>>, vector<1x128xf32>,
    return
  }
  func.func @transform_0(%arg0: i32) -> (i32, i32) {
    %c0_i32 = arith.constant 0 : i32
    %c0_i32_0 = arith.constant 0 : i32
    return %c0_i32, %arg0 : i32, i32
  }
  func.func @transform_1(%arg0: i32) -> (i32, i32) {
    %c0_i32 = arith.constant 0 : i32
    %c0_i32_0 = arith.constant 0 : i32
    %c0_i32_1 = arith.constant 0 : i32
    return %c0_i32, %c0_i32_0 : i32, i32
  }
  func.func @transform_2(%arg0: i32) -> (i32, i32) {
    %c0_i32 = arith.constant 0 : i32
    %c0_i32_0 = arith.constant 0 : i32
    %c0_i32_1 = arith.constant 0 : i32
    return %c0_i32, %c0_i32_0 : i32, i32
  }
  func.func @transform_3(%arg0: i32) -> (i32, i32) {
    %c0_i32 = arith.constant 0 : i32
    %c0_i32_0 = arith.constant 0 : i32
    %c0_i32_1 = arith.constant 0 : i32
    return %c0_i32, %c0_i32_0 : i32, i32
  }
  func.func @transform_4(%arg0: i32) -> (i32, i32) {
    %c0_i32 = arith.constant 0 : i32
    %c0_i32_0 = arith.constant 0 : i32
    %c0_i32_1 = arith.constant 0 : i32
    return %c0_i32, %c0_i32_0 : i32, i32
  }
  func.func @transform_5(%arg0: i32) -> (i32, i32) {
    %c0_i32 = arith.constant 0 : i32
    %c0_i32_0 = arith.constant 0 : i32
    %c0_i32_1 = arith.constant 0 : i32
    return %c0_i32, %c0_i32_0 : i32, i32
  }
  func.func @transform_6(%arg0: i32) -> (i32, i32) {
    %c0_i32 = arith.constant 0 : i32
    %c0_i32_0 = arith.constant 0 : i32
    %c0_i32_1 = arith.constant 0 : i32
    return %c0_i32, %c0_i32_0 : i32, i32
  }
  func.func @transform_7(%arg0: i32) -> (i32, i32) {
    %c0_i32 = arith.constant 0 : i32
    %c0_i32_0 = arith.constant 0 : i32
    %c0_i32_1 = arith.constant 0 : i32
    return %c0_i32, %c0_i32_0 : i32, i32
  }
  func.func @transform_8(%arg0: i32) -> (i32, i32) {
    %c0_i32 = arith.constant 0 : i32
    %c0_i32_0 = arith.constant 0 : i32
    return %c0_i32, %arg0 : i32, i32
  }
}

</mosaic_0001>

<bundles_post_ra>
// kernel: tpu_custom_call.1
= control target key start
LH: loop header
LB: loop body
LE: loop exit
PB: predicated region body
PF: predicated region fallthrough
CT: control target
= control target key end

     0   :  { %13 = vsyncpa [#allocation3], 0  ;;  %s2597_s0 = inlined_call_operand.vmem [shape: s32[4,128], index: 0, kind: input, shape index: {}]   ;;  %s2598_s1 = inlined_call_operand.vmem [shape: f32[128,128], index: 1, kind: input, shape index: {}]   ;;  %s2599_s2 = inlined_call_operand.vmem [shape: f32[256,128], index: 2, kind: input, shape index: {}]   ;;  %s2600_s3 = inlined_call_operand.hbm [shape: f32[128,128], index: 3, kind: input, shape index: {}]   ;;  %s2601_s4 = inlined_call_operand.vmem [shape: f32[128,1], index: 4, kind: input, shape index: {}]   ;;  %s2602_s5 = inlined_call_operand.hbm [shape: f32[128,128], index: 5, kind: input, shape index: {}]   ;;  %s2603_s6 = inlined_call_operand.vmem [shape: f32[128,1], index: 6, kind: input, shape index: {}]   ;;  %s2604_s7 = inlined_call_operand.vmem [shape: f32[128,1], index: 7, kind: input, shape index: {}]   ;;  %s2605_s8 = inlined_call_operand.hbm [shape: f32[1,128], index: 8, kind: output, shape index: {}]  }
   0x1   :  { %14 = vsyncpa [#allocation6], 0 }
   0x2   :  { %15 = vsyncpa [#allocation4], 0  ;;  %s1940_s27 = smov [#allocation2]  }
   0x3   :  { %s27_s28 = sshll.u32 %s1940_s27, 4  ;;  %s28_s28 = int_to_ptr.vmem [resolvable:$true] %s27_s28 }
   0x4   :  { %s1882_s29 = scalar_lea.vmem %s28_s28, 2048  ;;  %p1887_p1 = scmp.lt.s32.totalorder %s28_s28, %s28_s28 }
   0x5   :  { %p1883_p0 = scmp.ne.s32.totalorder %s28_s28, %s1882_s29  ;;  %p1888_p2 = scmp.lt.s32.totalorder %s1882_s29, %s1882_s29 }
   0x7   :  { %p1889_p3 = por %p1888_p2, %p1887_p1 }
   0x9   :  { %p1890_p4 = pnand %p1889_p3, %p1883_p0 }
   0xb   :  { %1893 = shalt.err (!%p1890_p4)
}
   0xc   :  { %s1941_s30 = smov 128   ;;  %s1942_s9 = smov 8  }
   0xd   :  { %33 = dma.hbm_to_vmem [thread:$0]  %s2600_s3, 2048, %s28_s28, [#allocation3], %s1941_s30, %s1941_s30, %s1942_s9  }
   0xe   :  { %s1943_s12 = smov [#allocation5]  }
   0xf   :  { %s41_s13 = sshll.u32 %s1943_s12, 4  ;;  %s42_s13 = int_to_ptr.vmem [resolvable:$true] %s41_s13 }
  0x10   :  { %s1902_s14 = scalar_lea.vmem %s42_s13, 2048  ;;  %p1907_p6 = scmp.lt.s32.totalorder %s42_s13, %s42_s13 }
  0x11   :  { %p1903_p5 = scmp.ne.s32.totalorder %s42_s13, %s1902_s14  ;;  %p1908_p7 = scmp.lt.s32.totalorder %s1902_s14, %s1902_s14 }
  0x13   :  { %p1909_p8 = por %p1908_p7, %p1907_p6 }
  0x15   :  { %p1910_p9 = pnand %p1909_p8, %p1903_p5 }
  0x17   :  { %1913 = shalt.err (!%p1910_p9)
}
  0x18   :  { %47 = dma.hbm_to_vmem [thread:$0]  %s2602_s5, 2048, %s42_s13, [#allocation6], %s1941_s30, %s1941_s30, %s1942_s9  }
  0x19   :  { %1934 = dma.done.wait [#allocation3], 2048  }
  0x1a   :  { %1935 = vsyncadd [#allocation3], 4294965248 }
  0x1b   :  { %1936 = dma.done.wait [#allocation6], 2048  }
  0x1c   :  { %1937 = vsyncadd [#allocation6], 4294965248  ;;  %v59_v0 = vlaneseq  ;;  %v58_v7 = vld [vmem:[%s2597_s0] sm:$0xf]  ;;  %v1944_v16 = vmov 1.0   ;;  %v237_v28 = vld [vmem:[%s2598_s1 + $0x8] sm:$0xff] }
  0x1d   :  { %v236_v13 = vld [vmem:[%s2598_s1] sm:$0xff]  ;;  %v238_v29 = vld [vmem:[%s2598_s1 + $0x10] sm:$0xff]  ;;  %v239_v30 = vld [vmem:[%s2598_s1 + $0x18] sm:$0xff] }
  0x1e   :  { %v1998_v1 = vshrl.u32 %v59_v0, 7  ;;  %1613 = vmatprep.mubr.f32.mxu0 %v236_v13  ;;  %v240_v31 = vld [vmem:[%s2598_s1 + $0x20] sm:$0xff]  ;;  %v241_v32 = vld [vmem:[%s2598_s1 + $0x28] sm:$0xff]  ;;  %v242_v33 = vld [vmem:[%s2598_s1 + $0x30] sm:$0xff] }
  0x1f   :  { %v243_v34 = vld [vmem:[%s2598_s1 + $0x38] sm:$0xff]  ;;  %v244_v35 = vld [vmem:[%s2598_s1 + $0x40] sm:$0xff]  ;;  %v245_v36 = vld [vmem:[%s2598_s1 + $0x48] sm:$0xff] }
  0x20   :  { %v78_v2 = vsub.s32 0, %v1998_v1  ;;  %v98_v3 = vsub.s32 1, %v1998_v1  ;;  %v134_v4 = vsub.s32 2, %v1998_v1  ;;  %v170_v5 = vsub.s32 3, %v1998_v1  ;;  %v246_v37 = vld [vmem:[%s2598_s1 + $0x50] sm:$0xff]  ;;  %v247_v38 = vld [vmem:[%s2598_s1 + $0x58] sm:$0xff] }
  0x21   :  { %v75_v6 = vadd.s32 120, %v1998_v1  ;;  %v74_v8 = vadd.s32 112, %v1998_v1  ;;  %v73_v14 = vadd.s32 104, %v1998_v1  ;;  %v72_v15 = vadd.s32 96, %v1998_v1  ;;  %v248_v39 = vld [vmem:[%s2598_s1 + $0x60] sm:$0xff]  ;;  %v249_v40 = vld [vmem:[%s2598_s1 + $0x68] sm:$0xff] }
  0x22   :  { %v2009_v9 = vrot.slane %v58_v7, %v78_v2  ;;  %v2011_v10 = vrot.slane %v58_v7, %v98_v3  ;;  %v2013_v11 = vrot.slane %v58_v7, %v134_v4  ;;  %v2015_v12 = vrot.slane %v58_v7, %v170_v5  ;;  %v250_v41 = vld [vmem:[%s2598_s1 + $0x70] sm:$0xff]  ;;  %v251_v42 = vld [vmem:[%s2598_s1 + $0x78] sm:$0xff]  ;;  %v397_v43 = vld [vmem:[%s2599_s2] sm:$0xff] }
  0x23   :  { %v71_v17 = vadd.s32 88, %v1998_v1  ;;  %v70_v18 = vadd.s32 80, %v1998_v1  ;;  %v69_v19 = vadd.s32 72, %v1998_v1  ;;  %v68_v20 = vadd.s32 64, %v1998_v1  ;;  %1669 = vmatprep.mubr.f32.mxu1 %v397_v43  ;;  %v398_v60 = vld [vmem:[%s2599_s2 + $0x8] sm:$0xff]  ;;  %v399_v61 = vld [vmem:[%s2599_s2 + $0x10] sm:$0xff] }
  0x24   :  { %vm95_vm0 = vcmp.eq.s32.totalorder %v75_v6, %v2009_v9  ;;  %vm115_vm1 = vcmp.eq.s32.totalorder %v75_v6, %v2011_v10  ;;  %vm151_vm2 = vcmp.eq.s32.totalorder %v75_v6, %v2013_v11  ;;  %vm187_vm3 = vcmp.eq.s32.totalorder %v75_v6, %v2015_v12  ;;  %v400_v62 = vld [vmem:[%s2599_s2 + $0x18] sm:$0xff]  ;;  %v401_v63 = vld [vmem:[%s2599_s2 + $0x20] sm:$0xff]  ;;  %v402_v0 = vld [vmem:[%s2599_s2 + $0x28] sm:$0xff] }
  0x25   :  { %vm131_vm4 = vmor %vm95_vm0, %vm115_vm1  ;;  %vm94_vm5 = vcmp.eq.s32.totalorder %v74_v8, %v2009_v9  ;;  %vm114_vm6 = vcmp.eq.s32.totalorder %v74_v8, %v2011_v10  ;;  %vm150_vm8 = vcmp.eq.s32.totalorder %v74_v8, %v2013_v11  ;;  %vm186_vm10 = vcmp.eq.s32.totalorder %v74_v8, %v2015_v12  ;;  %v404_v2 = vld [vmem:[%s2599_s2 + $0x38] sm:$0xff]  ;;  %v405_v3 = vld [vmem:[%s2599_s2 + $0x40] sm:$0xff] }
  0x26   :  { %vm167_vm7 = vmor %vm131_vm4, %vm151_vm2  ;;  %vm93_vm12 = vcmp.eq.s32.totalorder %v73_v14, %v2009_v9  ;;  %vm113_vm13 = vcmp.eq.s32.totalorder %v73_v14, %v2011_v10  ;;  %vm149_vm15 = vcmp.eq.s32.totalorder %v73_v14, %v2013_v11  ;;  %vm185_vm1 = vcmp.eq.s32.totalorder %v73_v14, %v2015_v12  ;;  %v406_v4 = vld [vmem:[%s2599_s2 + $0x48] sm:$0xff]  ;;  %v407_v5 = vld [vmem:[%s2599_s2 + $0x50] sm:$0xff] }
  0x27   :  { %vm203_vm9 = vmor %vm167_vm7, %vm187_vm3  ;;  %vm92_vm3 = vcmp.eq.s32.totalorder %v72_v15, %v2009_v9  ;;  %vm112_vm4 = vcmp.eq.s32.totalorder %v72_v15, %v2011_v10  ;;  %v67_v21 = vadd.s32 56, %v1998_v1  ;;  %v66_v22 = vadd.s32 48, %v1998_v1  ;;  %v408_v6 = vld [vmem:[%s2599_s2 + $0x58] sm:$0xff]  ;;  %v409_v7 = vld [vmem:[%s2599_s2 + $0x60] sm:$0xff] }
  0x28   :  { %1581 = vmatprep.subr.msk.mxu0 %vm203_vm9, %v1944_v16  ;;  %vm130_vm11 = vmor %vm94_vm5, %vm114_vm6  ;;  %vm148_vm6 = vcmp.eq.s32.totalorder %v72_v15, %v2013_v11  ;;  %v65_v23 = vadd.s32 40, %v1998_v1  ;;  %v64_v24 = vadd.s32 32, %v1998_v1  ;;  %v63_v25 = vadd.s32 24, %v1998_v1  ;;  %v410_v8 = vld [vmem:[%s2599_s2 + $0x68] sm:$0xff]  ;;  %v415_v13 = vld [vmem:[%s2599_s2 + $0x90] sm:$0xff] }
  0x29   :  { %1582 = vmatpush3.msk.msra.mxu0 %vm203_vm9, %v1944_v16  ;;  %vm166_vm14 = vmor %vm130_vm11, %vm150_vm8  ;;  %vm184_vm8 = vcmp.eq.s32.totalorder %v72_v15, %v2015_v12  ;;  %vm111_vm11 = vcmp.eq.s32.totalorder %v71_v17, %v2011_v10  ;;  %v62_v26 = vadd.s32 16, %v1998_v1  ;;  %v61_v27 = vadd.s32 8, %v1998_v1  ;;  %v416_v14 = vld [vmem:[%s2599_s2 + $0x98] sm:$0xff]  ;;  %v417_v15 = vld [vmem:[%s2599_s2 + $0xa0] sm:$0xff] }
  0x2a   :  { %vm202_vm0 = vmor %vm166_vm14, %vm186_vm10  ;;  %vm91_vm10 = vcmp.eq.s32.totalorder %v71_v17, %v2009_v9  ;;  %v704_v43 = vld [vmem:[%s2601_s4 + $0x10] sm:$0xff] }
  0x2b   :  { %1583 = vmatprep.subr.msk.mxu0 %vm202_vm0, %v1944_v16  ;;  %vm129_vm2 = vmor %vm93_vm12, %vm113_vm13  ;;  %vm147_vm13 = vcmp.eq.s32.totalorder %v71_v17, %v2013_v11 }
  0x2c   :  { %1584 = vmatpush3.msk.msra.mxu0 %vm202_vm0, %v1944_v16  ;;  %vm165_vm5 = vmor %vm129_vm2, %vm149_vm15  ;;  %vm183_vm15 = vcmp.eq.s32.totalorder %v71_v17, %v2015_v12  ;;  %vm110_vm2 = vcmp.eq.s32.totalorder %v70_v18, %v2011_v10  ;;  %v419_v17 = vld [vmem:[%s2599_s2 + $0xb0] sm:$0xff] }
  0x2d   :  { %vm201_vm7 = vmor %vm165_vm5, %vm185_vm1  ;;  %vm90_vm1 = vcmp.eq.s32.totalorder %v70_v18, %v2009_v9 }
  0x2e   :  { %1585 = vmatprep.subr.msk.mxu0 %vm201_vm7, %v1944_v16  ;;  %vm128_vm9 = vmor %vm92_vm3, %vm112_vm4  ;;  %vm146_vm4 = vcmp.eq.s32.totalorder %v70_v18, %v2013_v11 }
  0x2f   :  { %1586 = vmatpush3.msk.msra.mxu0 %vm201_vm7, %v1944_v16  ;;  %vm164_vm12 = vmor %vm128_vm9, %vm148_vm6  ;;  %vm182_vm6 = vcmp.eq.s32.totalorder %v70_v18, %v2015_v12  ;;  %vm109_vm9 = vcmp.eq.s32.totalorder %v69_v19, %v2011_v10  ;;  %v420_v18 = vld [vmem:[%s2599_s2 + $0xb8] sm:$0xff] }
  0x30   :  { %vm200_vm14 = vmor %vm164_vm12, %vm184_vm8  ;;  %vm89_vm8 = vcmp.eq.s32.totalorder %v69_v19, %v2009_v9 }
  0x31   :  { %1587 = vmatprep.subr.msk.mxu0 %vm200_vm14, %v1944_v16  ;;  %vm127_vm0 = vmor %vm91_vm10, %vm111_vm11  ;;  %vm145_vm11 = vcmp.eq.s32.totalorder %v69_v19, %v2013_v11 }
  0x32   :  { %1588 = vmatpush3.msk.msra.mxu0 %vm200_vm14, %v1944_v16  ;;  %vm163_vm3 = vmor %vm127_vm0, %vm147_vm13  ;;  %vm181_vm13 = vcmp.eq.s32.totalorder %v69_v19, %v2015_v12  ;;  %vm108_vm0 = vcmp.eq.s32.totalorder %v68_v20, %v2011_v10  ;;  %v421_v19 = vld [vmem:[%s2599_s2 + $0xc0] sm:$0xff] }
  0x33   :  { %vm199_vm5 = vmor %vm163_vm3, %vm183_vm15  ;;  %vm88_vm15 = vcmp.eq.s32.totalorder %v68_v20, %v2009_v9 }
  0x34   :  { %1589 = vmatprep.subr.msk.mxu0 %vm199_vm5, %v1944_v16  ;;  %vm126_vm7 = vmor %vm90_vm1, %vm110_vm2  ;;  %vm144_vm2 = vcmp.eq.s32.totalorder %v68_v20, %v2013_v11 }
  0x35   :  { %1590 = vmatpush3.msk.msra.mxu0 %vm199_vm5, %v1944_v16  ;;  %vm162_vm10 = vmor %vm126_vm7, %vm146_vm4  ;;  %vm180_vm4 = vcmp.eq.s32.totalorder %v68_v20, %v2015_v12  ;;  %vm107_vm7 = vcmp.eq.s32.totalorder %v67_v21, %v2011_v10  ;;  %v422_v20 = vld [vmem:[%s2599_s2 + $0xc8] sm:$0xff] }
  0x36   :  { %vm198_vm12 = vmor %vm162_vm10, %vm182_vm6  ;;  %vm87_vm6 = vcmp.eq.s32.totalorder %v67_v21, %v2009_v9 }
  0x37   :  { %1591 = vmatprep.subr.msk.mxu0 %vm198_vm12, %v1944_v16  ;;  %vm125_vm14 = vmor %vm89_vm8, %vm109_vm9  ;;  %vm143_vm9 = vcmp.eq.s32.totalorder %v67_v21, %v2013_v11 }
  0x38   :  { %1592 = vmatpush3.msk.msra.mxu0 %vm198_vm12, %v1944_v16  ;;  %vm161_vm1 = vmor %vm125_vm14, %vm145_vm11  ;;  %vm179_vm11 = vcmp.eq.s32.totalorder %v67_v21, %v2015_v12  ;;  %vm106_vm14 = vcmp.eq.s32.totalorder %v66_v22, %v2011_v10  ;;  %v423_v21 = vld [vmem:[%s2599_s2 + $0xd0] sm:$0xff] }
  0x39   :  { %vm197_vm3 = vmor %vm161_vm1, %vm181_vm13  ;;  %vm86_vm13 = vcmp.eq.s32.totalorder %v66_v22, %v2009_v9 }
  0x3a   :  { %1593 = vmatprep.subr.msk.mxu0 %vm197_vm3, %v1944_v16  ;;  %vm124_vm5 = vmor %vm88_vm15, %vm108_vm0  ;;  %vm142_vm0 = vcmp.eq.s32.totalorder %v66_v22, %v2013_v11 }
  0x3b   :  { %1594 = vmatpush3.msk.msra.mxu0 %vm197_vm3, %v1944_v16  ;;  %vm160_vm8 = vmor %vm124_vm5, %vm144_vm2  ;;  %vm178_vm2 = vcmp.eq.s32.totalorder %v66_v22, %v2015_v12  ;;  %vm105_vm5 = vcmp.eq.s32.totalorder %v65_v23, %v2011_v10  ;;  %v424_v22 = vld [vmem:[%s2599_s2 + $0xd8] sm:$0xff] }
  0x3c   :  { %vm196_vm10 = vmor %vm160_vm8, %vm180_vm4  ;;  %vm85_vm4 = vcmp.eq.s32.totalorder %v65_v23, %v2009_v9 }
  0x3d   :  { %1595 = vmatprep.subr.msk.mxu0 %vm196_vm10, %v1944_v16  ;;  %vm123_vm12 = vmor %vm87_vm6, %vm107_vm7  ;;  %vm141_vm7 = vcmp.eq.s32.totalorder %v65_v23, %v2013_v11 }
  0x3e   :  { %1596 = vmatpush3.msk.msra.mxu0 %vm196_vm10, %v1944_v16  ;;  %vm159_vm15 = vmor %vm123_vm12, %vm143_vm9  ;;  %vm177_vm9 = vcmp.eq.s32.totalorder %v65_v23, %v2015_v12  ;;  %vm104_vm12 = vcmp.eq.s32.totalorder %v64_v24, %v2011_v10  ;;  %v425_v23 = vld [vmem:[%s2599_s2 + $0xe0] sm:$0xff] }
  0x3f   :  { %vm195_vm1 = vmor %vm159_vm15, %vm179_vm11  ;;  %vm84_vm11 = vcmp.eq.s32.totalorder %v64_v24, %v2009_v9 }
  0x40   :  { %1597 = vmatprep.subr.msk.mxu0 %vm195_vm1, %v1944_v16  ;;  %vm122_vm3 = vmor %vm86_vm13, %vm106_vm14  ;;  %vm140_vm14 = vcmp.eq.s32.totalorder %v64_v24, %v2013_v11 }
  0x41   :  { %1598 = vmatpush3.msk.msra.mxu0 %vm195_vm1, %v1944_v16  ;;  %vm158_vm6 = vmor %vm122_vm3, %vm142_vm0  ;;  %vm176_vm0 = vcmp.eq.s32.totalorder %v64_v24, %v2015_v12  ;;  %vm103_vm3 = vcmp.eq.s32.totalorder %v63_v25, %v2011_v10  ;;  %v426_v24 = vld [vmem:[%s2599_s2 + $0xe8] sm:$0xff] }
  0x42   :  { %vm194_vm8 = vmor %vm158_vm6, %vm178_vm2  ;;  %vm83_vm2 = vcmp.eq.s32.totalorder %v63_v25, %v2009_v9 }
  0x43   :  { %1599 = vmatprep.subr.msk.mxu0 %vm194_vm8, %v1944_v16  ;;  %vm121_vm10 = vmor %vm85_vm4, %vm105_vm5  ;;  %vm139_vm5 = vcmp.eq.s32.totalorder %v63_v25, %v2013_v11 }
  0x44   :  { %1600 = vmatpush3.msk.msra.mxu0 %vm194_vm8, %v1944_v16  ;;  %vm157_vm13 = vmor %vm121_vm10, %vm141_vm7  ;;  %vm175_vm7 = vcmp.eq.s32.totalorder %v63_v25, %v2015_v12  ;;  %vm102_vm10 = vcmp.eq.s32.totalorder %v62_v26, %v2011_v10  ;;  %v427_v25 = vld [vmem:[%s2599_s2 + $0xf0] sm:$0xff] }
  0x45   :  { %vm193_vm15 = vmor %vm157_vm13, %vm177_vm9  ;;  %vm82_vm9 = vcmp.eq.s32.totalorder %v62_v26, %v2009_v9 }
  0x46   :  { %1601 = vmatprep.subr.msk.mxu0 %vm193_vm15, %v1944_v16  ;;  %vm120_vm1 = vmor %vm84_vm11, %vm104_vm12  ;;  %vm138_vm12 = vcmp.eq.s32.totalorder %v62_v26, %v2013_v11 }
  0x47   :  { %1602 = vmatpush3.msk.msra.mxu0 %vm193_vm15, %v1944_v16  ;;  %vm156_vm4 = vmor %vm120_vm1, %vm140_vm14  ;;  %vm174_vm14 = vcmp.eq.s32.totalorder %v62_v26, %v2015_v12  ;;  %vm101_vm1 = vcmp.eq.s32.totalorder %v61_v27, %v2011_v10  ;;  %v428_v26 = vld [vmem:[%s2599_s2 + $0xf8] sm:$0xff] }
  0x48   :  { %vm192_vm6 = vmor %vm156_vm4, %vm176_vm0  ;;  %vm81_vm0 = vcmp.eq.s32.totalorder %v61_v27, %v2009_v9 }
  0x49   :  { %1603 = vmatprep.subr.msk.mxu0 %vm192_vm6, %v1944_v16  ;;  %vm119_vm8 = vmor %vm83_vm2, %vm103_vm3  ;;  %vm137_vm3 = vcmp.eq.s32.totalorder %v61_v27, %v2013_v11 }
  0x4a   :  { %1604 = vmatpush3.msk.msra.mxu0 %vm192_vm6, %v1944_v16  ;;  %vm155_vm11 = vmor %vm119_vm8, %vm139_vm5  ;;  %vm173_vm5 = vcmp.eq.s32.totalorder %v61_v27, %v2015_v12  ;;  %vm100_vm8 = vcmp.eq.s32.totalorder %v1998_v1, %v2011_v10  ;;  %v412_v10 = vld [vmem:[%s2599_s2 + $0x78] sm:$0xff]  ;;  %v686_v27 = vld [vmem:[#allocation2] sm:$0xff] }
  0x4b   :  { %vm191_vm13 = vmor %vm155_vm11, %vm175_vm7  ;;  %vm80_vm7 = vcmp.eq.s32.totalorder %v1998_v1, %v2009_v9  ;;  %v411_v9 = vld [vmem:[%s2599_s2 + $0x70] sm:$0xff] }
  0x4c   :  { %1605 = vmatprep.subr.msk.mxu0 %vm191_vm13, %v1944_v16  ;;  %vm118_vm15 = vmor %vm82_vm9, %vm102_vm10  ;;  %vm136_vm10 = vcmp.eq.s32.totalorder %v1998_v1, %v2013_v11  ;;  %v413_v11 = vld [vmem:[%s2599_s2 + $0x80] sm:$0xff] }
  0x4d   :  { %1606 = vmatpush3.msk.msra.mxu0 %vm191_vm13, %v1944_v16  ;;  %vm154_vm2 = vmor %vm118_vm15, %vm138_vm12  ;;  %vm172_vm12 = vcmp.eq.s32.totalorder %v1998_v1, %v2015_v12  ;;  %v403_v1 = vld [vmem:[%s2599_s2 + $0x30] sm:$0xff]  ;;  %v414_v12 = vld [vmem:[%s2599_s2 + $0x88] sm:$0xff] }
  0x4e   :  { %vm190_vm4 = vmor %vm154_vm2, %vm174_vm14 }
  0x4f   :  { %1607 = vmatprep.subr.msk.mxu0 %vm190_vm4, %v1944_v16  ;;  %vm117_vm6 = vmor %vm81_vm0, %vm101_vm1 }
  0x50   :  { %1608 = vmatpush3.msk.msra.mxu0 %vm190_vm4, %v1944_v16  ;;  %vm153_vm9 = vmor %vm117_vm6, %vm137_vm3 }
  0x51   :  { %vm189_vm11 = vmor %vm153_vm9, %vm173_vm5 }
  0x52   :  { %1609 = vmatprep.subr.msk.mxu0 %vm189_vm11, %v1944_v16  ;;  %vm116_vm13 = vmor %vm80_vm7, %vm100_vm8 }
  0x53   :  { %1610 = vmatpush3.msk.msra.mxu0 %vm189_vm11, %v1944_v16  ;;  %vm152_vm14 = vmor %vm116_vm13, %vm136_vm10 }
  0x54   :  { %vm188_vm15 = vmor %vm152_vm14, %vm172_vm12 }
  0x55   :  { %1611 = vmatprep.subr.msk.mxu0 %vm188_vm15, %v1944_v16 }
  0x56   :  { %1612 = vmatpush3.msk.msra.mxu0 %vm188_vm15, %v1944_v16  ;;  %v418_v16 = vld [vmem:[%s2599_s2 + $0xa8] sm:$0xff] }
  0x57   :  { %1614 = vmatmul.mubr.f32.vlgmr.msra.gmra.mxu0 %v237_v28  ;;  %v1945_v28 = vmov 0  }
  0x58   :  { %1616 = vmatprep.mubr.f32.mxu0 %v238_v29  ;;  %1868 = vset.pattern.permute.xlu0 %v1945_v28  ;;  %v717_v29 = vld [vmem:[%s2601_s4 + $0x78] sm:$0xff] }
  0x59   :  { %1869 = vset.pattern.permute.xlu1 %v1945_v28  ;;  %795 = vperm.xlu0 %1868, %v717_v29   ;;  %v984_v28 = vld [vmem:[%s2603_s6 + $0x48] sm:$0xff]  ;;  %v1238_v29 = vld [vmem:[%s2604_s7 + $0x30] sm:$0xff] }
  0x5b   :  { %1617 = vmatmul.mubr.f32.gmra.mxu0 %v239_v30  ;;  %v716_v30 = vld [vmem:[%s2601_s4 + $0x70] sm:$0xff] }
  0x5c   :  { %1619 = vmatprep.mubr.f32.mxu0 %v240_v31  ;;  %v715_v31 = vld [vmem:[%s2601_s4 + $0x68] sm:$0xff] }
  0x5d   :  { %790 = vperm.xlu0 %1868, %v716_v30   ;;  %785 = vperm.xlu1 %1869, %v715_v31  }
  0x5f   :  { %1620 = vmatmul.mubr.f32.gmra.mxu0 %v241_v32  ;;  %v713_v32 = vld [vmem:[%s2601_s4 + $0x58] sm:$0xff] }
  0x60   :  { %1622 = vmatprep.mubr.f32.mxu0 %v242_v33  ;;  %v714_v33 = vld [vmem:[%s2601_s4 + $0x60] sm:$0xff] }
  0x61   :  { %775 = vperm.xlu0 %1868, %v713_v32   ;;  %780 = vperm.xlu1 %1869, %v714_v33   ;;  %v985_v32 = vld [vmem:[%s2603_s6 + $0x50] sm:$0xff]  ;;  %v1239_v33 = vld [vmem:[%s2604_s7 + $0x38] sm:$0xff] }
  0x63   :  { %1623 = vmatmul.mubr.f32.gmra.mxu0 %v243_v34  ;;  %v711_v34 = vld [vmem:[%s2601_s4 + $0x48] sm:$0xff] }
  0x64   :  { %1625 = vmatprep.mubr.f32.mxu0 %v244_v35  ;;  %v712_v35 = vld [vmem:[%s2601_s4 + $0x50] sm:$0xff] }
  0x65   :  { %765 = vperm.xlu0 %1868, %v711_v34   ;;  %770 = vperm.xlu1 %1869, %v712_v35  }
  0x67   :  { %1626 = vmatmul.mubr.f32.gmra.mxu0 %v245_v36  ;;  %v709_v36 = vld [vmem:[%s2601_s4 + $0x38] sm:$0xff] }
  0x68   :  { %1628 = vmatprep.mubr.f32.mxu0 %v246_v37  ;;  %v710_v37 = vld [vmem:[%s2601_s4 + $0x40] sm:$0xff] }
  0x69   :  { %755 = vperm.xlu0 %1868, %v709_v36   ;;  %760 = vperm.xlu1 %1869, %v710_v37   ;;  %v986_v36 = vld [vmem:[%s2603_s6 + $0x58] sm:$0xff]  ;;  %v1240_v37 = vld [vmem:[%s2604_s7 + $0x40] sm:$0xff] }
  0x6b   :  { %1629 = vmatmul.mubr.f32.gmra.mxu0 %v247_v38  ;;  %v707_v38 = vld [vmem:[%s2601_s4 + $0x28] sm:$0xff] }
  0x6c   :  { %1631 = vmatprep.mubr.f32.mxu0 %v248_v39  ;;  %v708_v39 = vld [vmem:[%s2601_s4 + $0x30] sm:$0xff] }
  0x6d   :  { %745 = vperm.xlu0 %1868, %v707_v38   ;;  %750 = vperm.xlu1 %1869, %v708_v39  }
  0x6f   :  { %1632 = vmatmul.mubr.f32.gmra.mxu0 %v249_v40  ;;  %v705_v40 = vld [vmem:[%s2601_s4 + $0x18] sm:$0xff] }
  0x70   :  { %1634 = vmatprep.mubr.f32.mxu0 %v250_v41  ;;  %v706_v41 = vld [vmem:[%s2601_s4 + $0x20] sm:$0xff] }
  0x71   :  { %735 = vperm.xlu0 %1868, %v705_v40   ;;  %740 = vperm.xlu1 %1869, %v706_v41   ;;  %v987_v40 = vld [vmem:[%s2603_s6 + $0x60] sm:$0xff]  ;;  %v1241_v41 = vld [vmem:[%s2604_s7 + $0x48] sm:$0xff] }
  0x73   :  { %1635 = vmatmul.mubr.f32.gmra.mxu0 %v251_v42  ;;  %v703_v42 = vld [vmem:[%s2601_s4 + $0x8] sm:$0xff] }
  0x74   :  { %1749 = vmatprep.mubr.f32.mxu0 %v686_v27 }
  0x75   :  { %725 = vperm.xlu0 %1868, %v703_v42   ;;  %730 = vperm.xlu1 %1869, %v704_v43  }
 0x117   :  { %v2181_v44 = vpop.f32.mrf.mxu0 }
 0x119   :  { %v2183_v45 = vpop.f32.mrf.mxu0 }
 0x11b   :  { %v2185_v46 = vpop.f32.mrf.mxu0 }
 0x11d   :  { %v2187_v47 = vpop.f32.mrf.mxu0 }
 0x11f   :  { %v2189_v48 = vpop.f32.mrf.mxu0 }
 0x121   :  { %v2191_v49 = vpop.f32.mrf.mxu0 }
 0x123   :  { %v2193_v50 = vpop.f32.mrf.mxu0 }
 0x125   :  { %v2195_v51 = vpop.f32.mrf.mxu0 }
 0x127   :  { %v2197_v52 = vpop.f32.mrf.mxu0 }
 0x129   :  { %v2199_v53 = vpop.f32.mrf.mxu0 }
 0x12b   :  { %v2201_v54 = vpop.f32.mrf.mxu0 }
 0x12c   :  { %2611 = vst [vmem:[#allocation11_spill] sm:$0xff] %v2201_v54 }
 0x12d   :  { %v2203_v55 = vpop.f32.mrf.mxu0 }
 0x12f   :  { %v2205_v56 = vpop.f32.mrf.mxu0 }
 0x130   :  { %2612 = vst [vmem:[#allocation12_spill] sm:$0xff] %v2205_v56 }
 0x131   :  { %v2207_v57 = vpop.f32.mrf.mxu0 }
 0x132   :  { %2613 = vst [vmem:[#allocation13_spill] sm:$0xff] %v2207_v57 }
 0x133   :  { %v2209_v58 = vpop.f32.mrf.mxu0 }
 0x134   :  { %2614 = vst [vmem:[#allocation14_spill] sm:$0xff] %v2209_v58  ;;  %1637 = vmatprep.subr.mxu1 %v2209_v58 }
 0x135   :  { %v2212_v59 = vpop.f32.mrf.mxu0  ;;  %1638 = vmatpush3.msra.mxu1 %v2209_v58 }
 0x136   :  { %2615 = vst [vmem:[#allocation15_spill] sm:$0xff] %v2212_v59  ;;  %1639 = vmatprep.subr.mxu1 %v2212_v59 }
 0x137   :  { %1640 = vmatpush3.msra.mxu1 %v2212_v59 }
 0x138   :  { %1641 = vmatprep.subr.mxu1 %v2205_v56 }
 0x139   :  { %1642 = vmatpush3.msra.mxu1 %v2205_v56 }
 0x13a   :  { %1643 = vmatprep.subr.mxu1 %v2207_v57 }
 0x13b   :  { %1644 = vmatpush3.msra.mxu1 %v2207_v57 }
 0x13c   :  { %1645 = vmatprep.subr.mxu1 %v2201_v54 }
 0x13d   :  { %1646 = vmatpush3.msra.mxu1 %v2201_v54 }
 0x13e   :  { %1647 = vmatprep.subr.mxu1 %v2203_v55 }
 0x13f   :  { %1648 = vmatpush3.msra.mxu1 %v2203_v55 }
 0x140   :  { %1649 = vmatprep.subr.mxu1 %v2197_v52 }
 0x141   :  { %1650 = vmatpush3.msra.mxu1 %v2197_v52 }
 0x142   :  { %1651 = vmatprep.subr.mxu1 %v2199_v53 }
 0x143   :  { %1652 = vmatpush3.msra.mxu1 %v2199_v53 }
 0x144   :  { %1653 = vmatprep.subr.mxu1 %v2193_v50 }
 0x145   :  { %1654 = vmatpush3.msra.mxu1 %v2193_v50 }
 0x146   :  { %1655 = vmatprep.subr.mxu1 %v2195_v51 }
 0x147   :  { %1656 = vmatpush3.msra.mxu1 %v2195_v51 }
 0x148   :  { %1657 = vmatprep.subr.mxu1 %v2189_v48 }
 0x149   :  { %1658 = vmatpush3.msra.mxu1 %v2189_v48 }
 0x14a   :  { %1659 = vmatprep.subr.mxu1 %v2191_v49 }
 0x14b   :  { %1660 = vmatpush3.msra.mxu1 %v2191_v49 }
 0x14c   :  { %1661 = vmatprep.subr.mxu1 %v2185_v46 }
 0x14d   :  { %1662 = vmatpush3.msra.mxu1 %v2185_v46 }
 0x14e   :  { %1663 = vmatprep.subr.mxu1 %v2187_v47 }
 0x14f   :  { %1664 = vmatpush3.msra.mxu1 %v2187_v47 }
 0x150   :  { %1665 = vmatprep.subr.mxu1 %v2181_v44 }
 0x151   :  { %1666 = vmatpush3.msra.mxu1 %v2181_v44 }
 0x152   :  { %1667 = vmatprep.subr.mxu1 %v2183_v45 }
 0x153   :  { %1668 = vmatpush3.msra.mxu1 %v2183_v45 }
 0x154   :  { %1670 = vmatmul.mubr.f32.vlgmr.msra.gmra.mxu1 %v398_v60  ;;  %v975_v60 = vld [vmem:[%s2603_s6] sm:$0xff] }
 0x155   :  { %1672 = vmatprep.mubr.f32.mxu1 %v399_v61  ;;  %v702_v61 = vld [vmem:[%s2601_s4] sm:$0xff]  ;;  %993 = vperm.xlu0 %1868, %v975_v60   ;;  %v988_v60 = vld [vmem:[%s2603_s6 + $0x68] sm:$0xff] }
 0x156   :  { %720 = vperm.xlu1 %1869, %v702_v61   ;;  %v1242_v61 = vld [vmem:[%s2604_s7 + $0x50] sm:$0xff] }
 0x158   :  { %1673 = vmatmul.mubr.f32.gmra.mxu1 %v400_v62 }
 0x159   :  { %1675 = vmatprep.mubr.f32.mxu1 %v401_v63 }
 0x15c   :  { %1676 = vmatmul.mubr.f32.gmra.mxu1 %v402_v0  ;;  %v977_v0 = vld [vmem:[%s2603_s6 + $0x10] sm:$0xff] }
 0x15d   :  { %1678 = vmatprep.mubr.f32.mxu1 %v403_v1  ;;  %v976_v1 = vld [vmem:[%s2603_s6 + $0x8] sm:$0xff]  ;;  %1003 = vperm.xlu0 %1868, %v977_v0  }
 0x15e   :  { %998 = vperm.xlu1 %1869, %v976_v1  }
 0x160   :  { %1679 = vmatmul.mubr.f32.gmra.mxu1 %v404_v2 }
 0x161   :  { %1681 = vmatprep.mubr.f32.mxu1 %v405_v3 }
 0x164   :  { %1682 = vmatmul.mubr.f32.gmra.mxu1 %v406_v4  ;;  %v1232_v4 = vld [vmem:[%s2604_s7] sm:$0xff] }
 0x165   :  { %1684 = vmatprep.mubr.f32.mxu1 %v407_v5  ;;  %v978_v5 = vld [vmem:[%s2603_s6 + $0x18] sm:$0xff]  ;;  %1250 = vperm.xlu0 %1868, %v1232_v4   ;;  %v989_v4 = vld [vmem:[%s2603_s6 + $0x70] sm:$0xff] }
 0x166   :  { %1008 = vperm.xlu1 %1869, %v978_v5   ;;  %v1243_v5 = vld [vmem:[%s2604_s7 + $0x58] sm:$0xff] }
 0x168   :  { %1685 = vmatmul.mubr.f32.gmra.mxu1 %v408_v6 }
 0x169   :  { %1687 = vmatprep.mubr.f32.mxu1 %v409_v7 }
 0x16c   :  { %1688 = vmatmul.mubr.f32.gmra.mxu1 %v410_v8  ;;  %v979_v8 = vld [vmem:[%s2603_s6 + $0x20] sm:$0xff] }
 0x16d   :  { %1690 = vmatprep.mubr.f32.mxu1 %v411_v9  ;;  %v1233_v9 = vld [vmem:[%s2604_s7 + $0x8] sm:$0xff]  ;;  %1013 = vperm.xlu0 %1868, %v979_v8  }
 0x16e   :  { %1255 = vperm.xlu1 %1869, %v1233_v9  }
 0x170   :  { %1691 = vmatmul.mubr.f32.gmra.mxu1 %v412_v10 }
 0x171   :  { %1693 = vmatprep.mubr.f32.mxu1 %v413_v11 }
 0x174   :  { %1694 = vmatmul.mubr.f32.gmra.mxu1 %v414_v12  ;;  %v980_v12 = vld [vmem:[%s2603_s6 + $0x28] sm:$0xff] }
 0x175   :  { %1696 = vmatprep.mubr.f32.mxu1 %v415_v13  ;;  %v1234_v13 = vld [vmem:[%s2604_s7 + $0x10] sm:$0xff]  ;;  %1018 = vperm.xlu0 %1868, %v980_v12   ;;  %v990_v12 = vld [vmem:[%s2603_s6 + $0x78] sm:$0xff] }
 0x176   :  { %1260 = vperm.xlu1 %1869, %v1234_v13   ;;  %v1244_v13 = vld [vmem:[%s2604_s7 + $0x60] sm:$0xff] }
 0x178   :  { %1697 = vmatmul.mubr.f32.gmra.mxu1 %v416_v14 }
 0x179   :  { %1699 = vmatprep.mubr.f32.mxu1 %v417_v15 }
 0x17c   :  { %1700 = vmatmul.mubr.f32.gmra.mxu1 %v418_v16  ;;  %v981_v16 = vld [vmem:[%s2603_s6 + $0x30] sm:$0xff] }
 0x17d   :  { %1702 = vmatprep.mubr.f32.mxu1 %v419_v17  ;;  %v1235_v17 = vld [vmem:[%s2604_s7 + $0x18] sm:$0xff]  ;;  %1023 = vperm.xlu0 %1868, %v981_v16  }
 0x17e   :  { %1265 = vperm.xlu1 %1869, %v1235_v17  }
 0x180   :  { %1703 = vmatmul.mubr.f32.gmra.mxu1 %v420_v18 }
 0x181   :  { %1705 = vmatprep.mubr.f32.mxu1 %v421_v19 }
 0x184   :  { %1706 = vmatmul.mubr.f32.gmra.mxu1 %v422_v20  ;;  %v982_v20 = vld [vmem:[%s2603_s6 + $0x38] sm:$0xff] }
 0x185   :  { %1708 = vmatprep.mubr.f32.mxu1 %v423_v21  ;;  %v1236_v21 = vld [vmem:[%s2604_s7 + $0x20] sm:$0xff]  ;;  %1028 = vperm.xlu0 %1868, %v982_v20   ;;  %v1246_v20 = vld [vmem:[%s2604_s7 + $0x70] sm:$0xff] }
 0x186   :  { %1270 = vperm.xlu1 %1869, %v1236_v21   ;;  %v1245_v21 = vld [vmem:[%s2604_s7 + $0x68] sm:$0xff] }
 0x188   :  { %1709 = vmatmul.mubr.f32.gmra.mxu1 %v424_v22 }
 0x189   :  { %1711 = vmatprep.mubr.f32.mxu1 %v425_v23 }
 0x18c   :  { %1712 = vmatmul.mubr.f32.gmra.mxu1 %v426_v24  ;;  %v983_v24 = vld [vmem:[%s2603_s6 + $0x40] sm:$0xff] }
 0x18d   :  { %1714 = vmatprep.mubr.f32.mxu1 %v427_v25  ;;  %v1237_v25 = vld [vmem:[%s2604_s7 + $0x28] sm:$0xff]  ;;  %1033 = vperm.xlu0 %1868, %v983_v24  }
 0x18e   :  { %1275 = vperm.xlu1 %1869, %v1237_v25  }
 0x190   :  { %1715 = vmatmul.mubr.f32.gmra.mxu1 %v428_v26 }
 0x191   :  { %1038 = vperm.xlu0 %1868, %v984_v28  }
 0x192   :  { %1280 = vperm.xlu1 %1869, %v1238_v29  }
 0x195   :  { %1043 = vperm.xlu0 %1868, %v985_v32   ;;  %v1247_v32 = vld [vmem:[%s2604_s7 + $0x78] sm:$0xff]  ;;  %s1946_s7 = smov [#allocation7]  }
 0x196   :  { %1285 = vperm.xlu1 %1869, %v1239_v33   ;;  %s1394_s19 = sshll.u32 %s1946_s7, 4  ;;  %s1395_s19 = int_to_ptr.vmem [resolvable:$true] %s1394_s19 }
 0x197   :  { %s1914_s20 = scalar_lea.vmem %s1395_s19, 16  ;;  %s1918_s21 = scalar_lea.vmem %s1395_s19, 32 }
 0x198   :  { %p1915_p10 = scmp.ne.s32.totalorder %s1395_s19, %s1914_s20  ;;  %p1919_p11 = scmp.lt.s32.totalorder %s1395_s19, %s1395_s19 }
 0x199   :  { %1048 = vperm.xlu0 %1868, %v986_v36   ;;  %p1920_p12 = scmp.lt.s32.totalorder %s1918_s21, %s1914_s20 }
 0x19a   :  { %1290 = vperm.xlu1 %1869, %v1240_v37  }
 0x19b   :  { %p1921_p13 = por %p1920_p12, %p1919_p11 }
 0x19d   :  { %1053 = vperm.xlu0 %1868, %v987_v40   ;;  %p1922_p0 = pnand %p1921_p13, %p1915_p10 }
 0x19e   :  { %1295 = vperm.xlu1 %1869, %v1241_v41  }
 0x1a1   :  { %1058 = vperm.xlu0 %1868, %v988_v60  }
 0x1a2   :  { %1300 = vperm.xlu1 %1869, %v1242_v61  }
 0x1a5   :  { %1063 = vperm.xlu0 %1868, %v989_v4  }
 0x1a6   :  { %1305 = vperm.xlu1 %1869, %v1243_v5  }
 0x1a9   :  { %1068 = vperm.xlu0 %1868, %v990_v12   ;;  %v692_v12 = vld [vmem:[#allocation2 + $0x30] sm:$0xff] }
 0x1aa   :  { %1310 = vperm.xlu1 %1869, %v1244_v13   ;;  %v694_v13 = vld [vmem:[#allocation2 + $0x40] sm:$0xff] }
 0x1ad   :  { %1320 = vperm.xlu0 %1868, %v1246_v20   ;;  %v698_v20 = vld [vmem:[#allocation2 + $0x60] sm:$0xff] }
 0x1ae   :  { %1315 = vperm.xlu1 %1869, %v1245_v21   ;;  %v699_v21 = vld [vmem:[#allocation2 + $0x68] sm:$0xff] }
 0x1b2   :  { %1325 = vperm.xlu1 %1869, %v1247_v32  }
 0x214   :  { %v2389_v62 = vpop.f32.mrf.mxu1 }
 0x215   :  { %v655_v59 = vmul.f32 %v2389_v62, %v2181_v44 }
 0x216   :  { %v2391_v63 = vpop.f32.mrf.mxu1 }
 0x218   :  { %v2399_v2 = vpop.f32.mrf.mxu1 }
 0x21a   :  { %v2401_v3 = vpop.f32.mrf.mxu1 }
 0x21b   :  { %v656_v44 = vmul.f32 %v2401_v3, %v2187_v47 }
 0x21c   :  { %v2409_v6 = vpop.f32.mrf.mxu1 }
 0x21e   :  { %v2411_v7 = vpop.f32.mrf.mxu1 }
 0x220   :  { %v2419_v10 = vpop.f32.mrf.mxu1 }
 0x222   :  { %v2421_v11 = vpop.f32.mrf.mxu1 }
 0x224   :  { %v2429_v14 = vpop.f32.mrf.mxu1 }
 0x226   :  { %v2431_v15 = vpop.f32.mrf.mxu1 }
 0x228   :  { %v2439_v18 = vpop.f32.mrf.mxu1 }
 0x229   :  { %2616 = vst [vmem:[#allocation16_spill] sm:$0xff] %v2439_v18 }
 0x22a   :  { %v2441_v19 = vpop.f32.mrf.mxu1 }
 0x22b   :  { %2617 = vst [vmem:[#allocation17_spill] sm:$0xff] %v2441_v19 }
 0x22c   :  { %v2449_v22 = vpop.f32.mrf.mxu1 }
 0x22d   :  { %2618 = vst [vmem:[#allocation18_spill] sm:$0xff] %v2449_v22  ;;  %v654_v22 = vmul.f32 %v2391_v63, %v2183_v45 }
 0x22e   :  { %v2451_v23 = vpop.f32.mrf.mxu1 }
 0x22f   :  { %2619 = vst [vmem:[#allocation19_spill] sm:$0xff] %v2451_v23 }
 0x230   :  { %v2459_v26 = vpop.f32.mrf.mxu1 }
 0x231   :  { %2620 = vst [vmem:[#allocation20_spill] sm:$0xff] %v2459_v26 }
 0x232   :  { %v2461_v27 = vpop.f32.mrf.mxu1 }
 0x233   :  { %2621 = vst [vmem:[#allocation21_spill] sm:$0xff] %v2461_v27 }
 0x234   :  { %v2469_v30 = vpop.f32.mrf.mxu1 }
 0x236   :  { %v2471_v31 = vpop.f32.mrf.mxu1 }
 0x238   :  { %v2479_v34 = vpop.f32.mrf.mxu1 }
 0x23a   :  { %v2481_v35 = vpop.f32.mrf.mxu1 }
 0x23c   :  { %v2489_v38 = vpop.f32.mrf.mxu1 }
 0x23d   :  { %v675_v5 = vmax.f32 %v2489_v38, 0.0  ;;  %v670_v38 = vmax.f32 %v2471_v31, 0.0  ;;  %v695_v31 = vld [vmem:[#allocation2 + $0x48] sm:$0xff] }
 0x23e   :  { %v2491_v39 = vpop.f32.mrf.mxu1 }
 0x240   :  { %v1704_v42 = vpop.f32.mrf.mxu1 }
 0x241   :  { %v677_v61 = vmax.f32 %v1704_v42, 0.0  ;;  %v671_v42 = vmax.f32 %v2469_v30, 0.0  ;;  %v693_v30 = vld [vmem:[#allocation2 + $0x38] sm:$0xff] }
 0x242   :  { %v605_v43 = vpop.f32.mrf.mxu1 }
 0x243   :  { %v676_v4 = vmax.f32 %v605_v43, 0.0  ;;  %v687_v43 = vld [vmem:[#allocation2 + $0x8] sm:$0xff] }
 0x244   :  { %v1707_v0 = vpop.f32.mrf.mxu1 }
 0x245   :  { %v679_v41 = vmax.f32 %v1707_v0, 0.0  ;;  %v673_v0 = vmax.f32 %v2479_v34, 0.0  ;;  %v689_v34 = vld [vmem:[#allocation2 + $0x18] sm:$0xff] }
 0x246   :  { %v615_v1 = vpop.f32.mrf.mxu1 }
 0x247   :  { %v678_v60 = vmax.f32 %v615_v1, 0.0  ;;  %v672_v1 = vmax.f32 %v2481_v35, 0.0  ;;  %v691_v35 = vld [vmem:[#allocation2 + $0x28] sm:$0xff] }
 0x248   :  { %v1710_v8 = vpop.f32.mrf.mxu1 }
 0x249   :  { %v681_v37 = vmax.f32 %v1710_v8, 0.0  ;;  %v674_v8 = vmax.f32 %v2491_v39, 0.0  ;;  %v688_v39 = vld [vmem:[#allocation2 + $0x10] sm:$0xff] }
 0x24a   :  { %v625_v9 = vpop.f32.mrf.mxu1 }
 0x24b   :  { %v680_v40 = vmax.f32 %v625_v9, 0.0  ;;  %v690_v9 = vld [vmem:[#allocation2 + $0x20] sm:$0xff] }
 0x24c   :  { %v1713_v16 = vpop.f32.mrf.mxu1 }
 0x24d   :  { %v683_v33 = vmax.f32 %v1713_v16, 0.0  ;;  %v696_v16 = vld [vmem:[#allocation2 + $0x50] sm:$0xff] }
 0x24e   :  { %v635_v17 = vpop.f32.mrf.mxu1 }
 0x24f   :  { %v682_v36 = vmax.f32 %v635_v17, 0.0  ;;  %v697_v17 = vld [vmem:[#allocation2 + $0x58] sm:$0xff] }
 0x250   :  { %v1716_v24 = vpop.f32.mrf.mxu1 }
 0x251   :  { %v685_v25 = vmax.f32 %v1716_v24, 0.0  ;;  %v700_v24 = vld [vmem:[#allocation2 + $0x70] sm:$0xff] }
 0x252   :  { %v645_v28 = vpop.f32.mrf.mxu1 }
 0x253   :  { %v684_v29 = vmax.f32 %v645_v28, 0.0  ;;  %1717 = vmatprep.subr.mxu0 %v685_v25  ;;  %v959_v28 = vld [vmem:[#allocation5] sm:$0xff] }
 0x254   :  { %1718 = vmatpush3.msra.mxu0 %v685_v25  ;;  %v701_v25 = vld [vmem:[#allocation2 + $0x78] sm:$0xff] }
 0x255   :  { %1719 = vmatprep.subr.mxu0 %v684_v29 }
 0x256   :  { %1720 = vmatpush3.msra.mxu0 %v684_v29  ;;  %v967_v29 = vld [vmem:[#allocation5 + $0x40] sm:$0xff] }
 0x257   :  { %1721 = vmatprep.subr.mxu0 %v683_v33  ;;  %1817 = vmatprep.mubr.f32.mxu1 %v967_v29 }
 0x258   :  { %1722 = vmatpush3.msra.mxu0 %v683_v33 }
 0x259   :  { %1723 = vmatprep.subr.mxu0 %v682_v36 }
 0x25a   :  { %1724 = vmatpush3.msra.mxu0 %v682_v36 }
 0x25b   :  { %1725 = vmatprep.subr.mxu0 %v681_v37 }
 0x25c   :  { %1726 = vmatpush3.msra.mxu0 %v681_v37 }
 0x25d   :  { %1727 = vmatprep.subr.mxu0 %v680_v40 }
 0x25e   :  { %1728 = vmatpush3.msra.mxu0 %v680_v40 }
 0x25f   :  { %1729 = vmatprep.subr.mxu0 %v679_v41 }
 0x260   :  { %1730 = vmatpush3.msra.mxu0 %v679_v41 }
 0x261   :  { %1731 = vmatprep.subr.mxu0 %v678_v60 }
 0x262   :  { %1732 = vmatpush3.msra.mxu0 %v678_v60  ;;  %v796_v60 = vpop.permute.xlu0 %795 }
 0x263   :  { %1733 = vmatprep.subr.mxu0 %v677_v61 }
 0x264   :  { %1734 = vmatpush3.msra.mxu0 %v677_v61 }
 0x265   :  { %1735 = vmatprep.subr.mxu0 %v676_v4 }
 0x266   :  { %1736 = vmatpush3.msra.mxu0 %v676_v4  ;;  %v786_v4 = vpop.permute.xlu1 %785 }
 0x267   :  { %1737 = vmatprep.subr.mxu0 %v675_v5 }
 0x268   :  { %1738 = vmatpush3.msra.mxu0 %v675_v5 }
 0x269   :  { %1739 = vmatprep.subr.mxu0 %v674_v8 }
 0x26a   :  { %1740 = vmatpush3.msra.mxu0 %v674_v8 }
 0x26b   :  { %1741 = vmatprep.subr.mxu0 %v673_v0 }
 0x26c   :  { %1742 = vmatpush3.msra.mxu0 %v673_v0  ;;  %v791_v0 = vpop.permute.xlu0 %790 }
 0x26d   :  { %1743 = vmatprep.subr.mxu0 %v672_v1 }
 0x26e   :  { %1744 = vmatpush3.msra.mxu0 %v672_v1 }
 0x26f   :  { %1745 = vmatprep.subr.mxu0 %v671_v42 }
 0x270   :  { %1746 = vmatpush3.msra.mxu0 %v671_v42  ;;  %v781_v42 = vpop.permute.xlu1 %780 }
 0x271   :  { %1747 = vmatprep.subr.mxu0 %v670_v38 }
 0x272   :  { %1748 = vmatpush3.msra.mxu0 %v670_v38 }
 0x273   :  { %1750 = vmatmul.mubr.f32.vlgmr.msra.gmra.mxu0 %v687_v43 }
 0x274   :  { %1752 = vmatprep.mubr.f32.mxu0 %v688_v39  ;;  %v776_v39 = vpop.permute.xlu0 %775 }
 0x277   :  { %1753 = vmatmul.mubr.f32.gmra.mxu0 %v689_v34 }
 0x278   :  { %1755 = vmatprep.mubr.f32.mxu0 %v690_v9  ;;  %v771_v9 = vpop.permute.xlu1 %770 }
 0x27b   :  { %1756 = vmatmul.mubr.f32.gmra.mxu0 %v691_v35 }
 0x27c   :  { %1758 = vmatprep.mubr.f32.mxu0 %v692_v12 }
 0x27f   :  { %1759 = vmatmul.mubr.f32.gmra.mxu0 %v693_v30 }
 0x280   :  { %1761 = vmatprep.mubr.f32.mxu0 %v694_v13  ;;  %v766_v13 = vpop.permute.xlu0 %765 }
 0x283   :  { %1762 = vmatmul.mubr.f32.gmra.mxu0 %v695_v31 }
 0x284   :  { %1764 = vmatprep.mubr.f32.mxu0 %v696_v16  ;;  %v756_v26 = vpop.permute.xlu0 %755 }
 0x287   :  { %1765 = vmatmul.mubr.f32.gmra.mxu0 %v697_v17 }
 0x288   :  { %1767 = vmatprep.mubr.f32.mxu0 %v698_v20 }
 0x28b   :  { %1768 = vmatmul.mubr.f32.gmra.mxu0 %v699_v21  ;;  %v761_v21 = vpop.permute.xlu1 %760 }
 0x28c   :  { %1770 = vmatprep.mubr.f32.mxu0 %v700_v24 }
 0x28f   :  { %1771 = vmatmul.mubr.f32.gmra.mxu0 %v701_v25 }
 0x290   :  { %1805 = vmatprep.mubr.f32.mxu0 %v959_v28 }
 0x333   :  { %v2532_v32 = vpop.f32.mrf.mxu0 }
 0x335   :  { %v2534_v33 = vpop.f32.mrf.mxu0 }
 0x337   :  { %v2536_v36 = vpop.f32.mrf.mxu0 }
 0x339   :  { %v2538_v37 = vpop.f32.mrf.mxu0 }
 0x33b   :  { %v2540_v40 = vpop.f32.mrf.mxu0 }
 0x33d   :  { %v2542_v41 = vpop.f32.mrf.mxu0 }
 0x33f   :  { %v1760_v61 = vpop.f32.mrf.mxu0 }
 0x341   :  { %v894_v5 = vpop.f32.mrf.mxu0 }
 0x343   :  { %v1763_v8 = vpop.f32.mrf.mxu0 }
 0x345   :  { %v904_v1 = vpop.f32.mrf.mxu0 }
 0x347   :  { %v1766_v38 = vpop.f32.mrf.mxu0 }
 0x348   :  { %v920_v28 = vadd.f32 %v1766_v38, %v776_v39  ;;  %v905_v38 = vadd.f32 %v904_v1, %v761_v21 }
 0x349   :  { %v914_v43 = vpop.f32.mrf.mxu0 }
 0x34b   :  { %v1769_v34 = vpop.f32.mrf.mxu0 }
 0x34c   :  { %v930_v16 = vadd.f32 %v1769_v34, %v786_v4  ;;  %v751_v4 = vpop.permute.xlu1 %750  ;;  %v746_v34 = vpop.permute.xlu0 %745 }
 0x34d   :  { %v924_v35 = vpop.f32.mrf.mxu0  ;;  %v890_v1 = vadd.f32 %v2540_v40, %v746_v34  ;;  %v972_v34 = vld [vmem:[#allocation5 + $0x68] sm:$0xff] }
 0x34e   :  { %v925_v24 = vadd.f32 %v924_v35, %v781_v42  ;;  %v956_v29 = vmax.f32 %v930_v16, 0.0  ;;  %v954_v42 = vmax.f32 %v920_v28, 0.0 }
 0x34f   :  { %v1772_v12 = vpop.f32.mrf.mxu0 }
 0x350   :  { %v940_v30 = vadd.f32 %v1772_v12, %v796_v60  ;;  %v915_v60 = vadd.f32 %v914_v43, %v771_v9  ;;  %v955_v12 = vmax.f32 %v925_v24, 0.0  ;;  %v900_v43 = vadd.f32 %v1760_v61, %v756_v26  ;;  %v741_v35 = vpop.permute.xlu1 %740 }
 0x351   :  { %v934_v31 = vpop.f32.mrf.mxu0  ;;  %v885_v26 = vadd.f32 %v2542_v41, %v741_v35  ;;  %v966_v35 = vld [vmem:[#allocation5 + $0x38] sm:$0xff] }
 0x352   :  { %v958_v17 = vmax.f32 %v940_v30, 0.0  ;;  %v935_v20 = vadd.f32 %v934_v31, %v791_v0  ;;  %v910_v0 = vadd.f32 %v1763_v8, %v766_v13  ;;  %v953_v39 = vmax.f32 %v915_v60, 0.0  ;;  %v736_v31 = vpop.permute.xlu0 %735  ;;  %v968_v60 = vld [vmem:[#allocation5 + $0x48] sm:$0xff] }
 0x353   :  { %v895_v8 = vadd.f32 %v894_v5, %v751_v4  ;;  %v951_v30 = vmax.f32 %v905_v38, 0.0  ;;  %v950_v13 = vmax.f32 %v900_v43, 0.0  ;;  %v880_v5 = vadd.f32 %v2536_v36, %v736_v31  ;;  %v962_v4 = vld [vmem:[#allocation5 + $0x18] sm:$0xff]  ;;  %v971_v38 = vld [vmem:[#allocation5 + $0x60] sm:$0xff]  ;;  %v965_v43 = vld [vmem:[#allocation5 + $0x30] sm:$0xff] }
 0x354   :  { %v957_v25 = vmax.f32 %v935_v20, 0.0  ;;  %1773 = vmatprep.subr.mxu0 %v958_v17  ;;  %1829 = vmatprep.subr.mxu1 %v958_v17  ;;  %v952_v9 = vmax.f32 %v910_v0, 0.0  ;;  %v731_v16 = vpop.permute.xlu1 %730  ;;  %v947_v20 = vmax.f32 %v885_v26, 0.0  ;;  %v970_v0 = vld [vmem:[#allocation5 + $0x58] sm:$0xff] }
 0x355   :  { %1774 = vmatpush3.msra.mxu0 %v958_v17  ;;  %1845 = vmatpush3.msra.mxu1 %v958_v17  ;;  %v949_v61 = vmax.f32 %v895_v8, 0.0  ;;  %v948_v17 = vmax.f32 %v890_v1, 0.0  ;;  %v875_v40 = vadd.f32 %v2538_v37, %v731_v16  ;;  %v946_v24 = vmax.f32 %v880_v5, 0.0  ;;  %v974_v8 = vld [vmem:[#allocation5 + $0x78] sm:$0xff] }
 0x356   :  { %1775 = vmatprep.subr.mxu0 %v957_v25  ;;  %1830 = vmatprep.subr.mxu1 %v957_v25  ;;  %v726_v21 = vpop.permute.xlu0 %725 }
 0x357   :  { %1776 = vmatpush3.msra.mxu0 %v957_v25  ;;  %1846 = vmatpush3.msra.mxu1 %v957_v25  ;;  %v870_v41 = vadd.f32 %v2532_v32, %v726_v21  ;;  %v945_v28 = vmax.f32 %v875_v40, 0.0  ;;  %v960_v32 = vld [vmem:[#allocation5 + $0x8] sm:$0xff] }
 0x358   :  { %1777 = vmatprep.subr.mxu0 %v956_v29  ;;  %1831 = vmatprep.subr.mxu1 %v956_v29  ;;  %v721_v25 = vpop.permute.xlu1 %720 }
 0x359   :  { %1778 = vmatpush3.msra.mxu0 %v956_v29  ;;  %1847 = vmatpush3.msra.mxu1 %v956_v29  ;;  %v865_v36 = vadd.f32 %v2534_v33, %v721_v25  ;;  %v944_v37 = vmax.f32 %v870_v41, 0.0  ;;  %v961_v33 = vld [vmem:[#allocation5 + $0x10] sm:$0xff] }
 0x35a   :  { %1779 = vmatprep.subr.mxu0 %v955_v12  ;;  %1832 = vmatprep.subr.mxu1 %v955_v12 }
 0x35b   :  { %1780 = vmatpush3.msra.mxu0 %v955_v12  ;;  %1848 = vmatpush3.msra.mxu1 %v955_v12  ;;  %v943_v29 = vmax.f32 %v865_v36, 0.0  ;;  %v969_v12 = vld [vmem:[#allocation5 + $0x50] sm:$0xff] }
 0x35c   :  { %1781 = vmatprep.subr.mxu0 %v954_v42  ;;  %1833 = vmatprep.subr.mxu1 %v954_v42  ;;  %v999_v1 = vpop.permute.xlu1 %998 }
 0x35d   :  { %1782 = vmatpush3.msra.mxu0 %v954_v42  ;;  %1849 = vmatpush3.msra.mxu1 %v954_v42  ;;  %v963_v42 = vld [vmem:[#allocation5 + $0x20] sm:$0xff] }
 0x35e   :  { %1783 = vmatprep.subr.mxu0 %v953_v39  ;;  %1834 = vmatprep.subr.mxu1 %v953_v39 }
 0x35f   :  { %1784 = vmatpush3.msra.mxu0 %v953_v39  ;;  %1850 = vmatpush3.msra.mxu1 %v953_v39  ;;  %v964_v39 = vld [vmem:[#allocation5 + $0x28] sm:$0xff] }
 0x360   :  { %1785 = vmatprep.subr.mxu0 %v952_v9  ;;  %1835 = vmatprep.subr.mxu1 %v952_v9  ;;  %v1009_v31 = vpop.permute.xlu1 %1008 }
 0x361   :  { %1786 = vmatpush3.msra.mxu0 %v952_v9  ;;  %1851 = vmatpush3.msra.mxu1 %v952_v9  ;;  %v973_v9 = vld [vmem:[#allocation5 + $0x70] sm:$0xff] }
 0x362   :  { %1787 = vmatprep.subr.mxu0 %v951_v30  ;;  %1836 = vmatprep.subr.mxu1 %v951_v30 }
 0x363   :  { %1788 = vmatpush3.msra.mxu0 %v951_v30  ;;  %1852 = vmatpush3.msra.mxu1 %v951_v30  ;;  %v994_v30 = vpop.permute.xlu0 %993 }
 0x364   :  { %1789 = vmatprep.subr.mxu0 %v950_v13  ;;  %1837 = vmatprep.subr.mxu1 %v950_v13 }
 0x365   :  { %1790 = vmatpush3.msra.mxu0 %v950_v13  ;;  %1853 = vmatpush3.msra.mxu1 %v950_v13 }
 0x366   :  { %1791 = vmatprep.subr.mxu0 %v949_v61  ;;  %1838 = vmatprep.subr.mxu1 %v949_v61 }
 0x367   :  { %1792 = vmatpush3.msra.mxu0 %v949_v61  ;;  %1854 = vmatpush3.msra.mxu1 %v949_v61  ;;  %v1004_v13 = vpop.permute.xlu0 %1003  ;;  %v1256_v61 = vpop.permute.xlu1 %1255 }
 0x368   :  { %1793 = vmatprep.subr.mxu0 %v948_v17  ;;  %1839 = vmatprep.subr.mxu1 %v948_v17 }
 0x369   :  { %1794 = vmatpush3.msra.mxu0 %v948_v17  ;;  %1855 = vmatpush3.msra.mxu1 %v948_v17 }
 0x36a   :  { %1795 = vmatprep.subr.mxu0 %v947_v20  ;;  %1840 = vmatprep.subr.mxu1 %v947_v20 }
 0x36b   :  { %1796 = vmatpush3.msra.mxu0 %v947_v20  ;;  %1856 = vmatpush3.msra.mxu1 %v947_v20  ;;  %v1251_v26 = vpop.permute.xlu0 %1250  ;;  %v1261_v5 = vpop.permute.xlu1 %1260 }
 0x36c   :  { %1797 = vmatprep.subr.mxu0 %v946_v24  ;;  %1841 = vmatprep.subr.mxu1 %v946_v24 }
 0x36d   :  { %1798 = vmatpush3.msra.mxu0 %v946_v24  ;;  %1857 = vmatpush3.msra.mxu1 %v946_v24 }
 0x36e   :  { %1799 = vmatprep.subr.mxu0 %v945_v28  ;;  %1842 = vmatprep.subr.mxu1 %v945_v28 }
 0x36f   :  { %1800 = vmatpush3.msra.mxu0 %v945_v28  ;;  %1858 = vmatpush3.msra.mxu1 %v945_v28  ;;  %v1014_v16 = vpop.permute.xlu0 %1013  ;;  %v1266_v40 = vpop.permute.xlu1 %1265 }
 0x370   :  { %1801 = vmatprep.subr.mxu0 %v944_v37  ;;  %1843 = vmatprep.subr.mxu1 %v944_v37 }
 0x371   :  { %1802 = vmatpush3.msra.mxu0 %v944_v37  ;;  %1859 = vmatpush3.msra.mxu1 %v944_v37 }
 0x372   :  { %1803 = vmatprep.subr.mxu0 %v943_v29  ;;  %1844 = vmatprep.subr.mxu1 %v943_v29 }
 0x373   :  { %1804 = vmatpush3.msra.mxu0 %v943_v29  ;;  %1860 = vmatpush3.msra.mxu1 %v943_v29  ;;  %v1019_v17 = vpop.permute.xlu0 %1018  ;;  %v1271_v21 = vpop.permute.xlu1 %1270 }
 0x374   :  { %1806 = vmatmul.mubr.f32.vlgmr.msra.gmra.mxu0 %v960_v32  ;;  %1818 = vmatmul.mubr.f32.vlgmr.msra.gmra.mxu1 %v968_v60 }
 0x375   :  { %1808 = vmatprep.mubr.f32.mxu0 %v961_v33  ;;  %1820 = vmatprep.mubr.f32.mxu1 %v969_v12 }
 0x377   :  { %v1024_v20 = vpop.permute.xlu0 %1023  ;;  %v1276_v24 = vpop.permute.xlu1 %1275 }
 0x378   :  { %1809 = vmatmul.mubr.f32.gmra.mxu0 %v962_v4  ;;  %1821 = vmatmul.mubr.f32.gmra.mxu1 %v970_v0 }
 0x379   :  { %1811 = vmatprep.mubr.f32.mxu0 %v963_v42  ;;  %1823 = vmatprep.mubr.f32.mxu1 %v971_v38 }
 0x37b   :  { %v1029_v41 = vpop.permute.xlu0 %1028  ;;  %v2550_v36 = vpop.permute.xlu1 %1280 }
 0x37c   :  { %1812 = vmatmul.mubr.f32.gmra.mxu0 %v964_v39  ;;  %1824 = vmatmul.mubr.f32.gmra.mxu1 %v972_v34 }
 0x37d   :  { %1814 = vmatprep.mubr.f32.mxu0 %v965_v43  ;;  %1826 = vmatprep.mubr.f32.mxu1 %v973_v9 }
 0x37f   :  { %v1034_v25 = vpop.permute.xlu0 %1033  ;;  %v2552_v37 = vpop.permute.xlu1 %1285 }
 0x380   :  { %1815 = vmatmul.mubr.f32.gmra.mxu0 %v966_v35  ;;  %1827 = vmatmul.mubr.f32.gmra.mxu1 %v974_v8 }
 0x383   :  { %v1039_v28 = vpop.permute.xlu0 %1038  ;;  %v2554_v32 = vpop.permute.xlu1 %1290 }
 0x387   :  { %v1044_v29 = vpop.permute.xlu0 %1043  ;;  %v2556_v9 = vpop.permute.xlu1 %1295 }
 0x38b   :  { %v1049_v42 = vpop.permute.xlu0 %1048 }
 0x434   :  { %v1807_v60 = vpop.f32.mrf.mxu0  ;;  %v1819_v33 = vpop.f32.mrf.mxu1 }
 0x435   :  { %v1143_v12 = vadd.f32 %v1807_v60, %v999_v1 }
 0x436   :  { %v1137_v4 = vpop.f32.mrf.mxu0  ;;  %v1177_v0 = vpop.f32.mrf.mxu1 }
 0x437   :  { %v1217_v38 = vmax.f32 %v1143_v12, 0.0  ;;  %v1138_v39 = vadd.f32 %v1137_v4, %v994_v30  ;;  %v1054_v30 = vpop.permute.xlu0 %1053 }
 0x438   :  { %v1810_v34 = vpop.f32.mrf.mxu0  ;;  %v1822_v43 = vpop.f32.mrf.mxu1 }
 0x439   :  { %v1329_v35 = vmul.f32 %v1256_v61, %v1217_v38  ;;  %v1216_v8 = vmax.f32 %v1138_v39, 0.0  ;;  %v1153_v58 = vadd.f32 %v1810_v34, %v1009_v31  ;;  %v1301_v38 = vpop.permute.xlu1 %1300 }
 0x43a   :  { %v1147_v27 = vpop.f32.mrf.mxu0  ;;  %v1187_v60 = vpop.f32.mrf.mxu1 }
 0x43b   :  { %v1328_v1 = vmul.f32 %v1251_v26, %v1216_v8  ;;  %v1219_v56 = vmax.f32 %v1153_v58, 0.0  ;;  %v1148_v23 = vadd.f32 %v1147_v27, %v1004_v13  ;;  %v1345_v4 = vadd.f32 %v1329_v35, %v655_v59 }
 0x43c   :  { %v1813_v12 = vpop.f32.mrf.mxu0  ;;  %v1825_v34 = vpop.f32.mrf.mxu1  ;;  %v657_v58 = vmul.f32 %v2399_v2, %v2185_v46  ;;  %v1178_v27 = vadd.f32 %v1177_v0, %v1034_v25  ;;  %v1183_v26 = vadd.f32 %v1819_v33, %v1039_v28  ;;  %v659_v2 = vmul.f32 %v2409_v6, %v2189_v48 }
 0x43d   :  { %v1344_v57 = vadd.f32 %v1328_v1, %v654_v22  ;;  %v1163_v18 = vadd.f32 %v1813_v12, %v1019_v17  ;;  %v1218_v54 = vmax.f32 %v1148_v23, 0.0  ;;  %v1331_v39 = vmul.f32 %v1266_v40, %v1219_v56  ;;  %v1059_v56 = vpop.permute.xlu0 %1058 }
 0x43e   :  { %v1157_v61 = vpop.f32.mrf.mxu0  ;;  %v1197_v40 = vpop.f32.mrf.mxu1  ;;  %v1224_v35 = vmax.f32 %v1178_v27, 0.0  ;;  %v1193_v28 = vadd.f32 %v1822_v43, %v1049_v42  ;;  %v661_v8 = vmul.f32 %v2419_v10, %v2193_v50  ;;  %v663_v50 = vmul.f32 %v2429_v14, %v2197_v52  ;;  %v2624_v27 = vld [vmem:[#allocation16_spill] sm:$0xff] }
 0x43f   :  { %v1360_v31 = vadd.f32 %v1345_v4, %v1344_v57  ;;  %v1158_v19 = vadd.f32 %v1157_v61, %v1014_v16  ;;  %v1330_v45 = vmul.f32 %v1261_v5, %v1218_v54  ;;  %v1221_v62 = vmax.f32 %v1163_v18, 0.0  ;;  %v1306_v5 = vpop.permute.xlu1 %1305 }
 0x440   :  { %v1816_v63 = vpop.f32.mrf.mxu0  ;;  %v658_v57 = vmul.f32 %v2411_v7, %v2191_v49  ;;  %v1347_v16 = vadd.f32 %v1331_v39, %v657_v58  ;;  %v660_v49 = vmul.f32 %v2421_v11, %v2195_v51  ;;  %v1225_v7 = vmax.f32 %v1183_v26, 0.0 }
 0x441   :  { %v1220_v59 = vmax.f32 %v1158_v19, 0.0  ;;  %v1346_v22 = vadd.f32 %v1330_v45, %v656_v44  ;;  %v1173_v13 = vadd.f32 %v1816_v63, %v1029_v41  ;;  %v1333_v54 = vmul.f32 %v1276_v24, %v1221_v62  ;;  %v1064_v1 = vpop.permute.xlu0 %1063  ;;  %v2622_v44 = vld [vmem:[#allocation17_spill] sm:$0xff] }
 0x442   :  { %v1167_v23 = vpop.f32.mrf.mxu0  ;;  %v1188_v19 = vadd.f32 %v1187_v60, %v1044_v29  ;;  %v1336_v48 = vmul.f32 %v2554_v32, %v1224_v35  ;;  %v1198_v29 = vadd.f32 %v1197_v40, %v1054_v30  ;;  %v662_v51 = vmul.f32 %v2431_v15, %v2199_v53 }
 0x443   :  { %v1332_v17 = vmul.f32 %v1271_v21, %v1220_v59  ;;  %v1361_v47 = vadd.f32 %v1360_v31, %v1346_v22  ;;  %v1223_v3 = vmax.f32 %v1173_v13, 0.0  ;;  %v1168_v18 = vadd.f32 %v1167_v23, %v1024_v20  ;;  %v1828_v21 = vpop.f32.mrf.mxu1  ;;  %v1311_v11 = vpop.permute.xlu1 %1310  ;;  %v2625_v23 = vld [vmem:[#allocation13_spill] sm:$0xff] }
 0x444   :  { %v1349_v33 = vadd.f32 %v1333_v54, %v659_v2  ;;  %v1226_v6 = vmax.f32 %v1188_v19, 0.0  ;;  %v1337_v42 = vmul.f32 %v2556_v9, %v1225_v7  ;;  %v1203_v4 = vadd.f32 %v1825_v34, %v1059_v56  ;;  %v2623_v34 = vld [vmem:[#allocation11_spill] sm:$0xff]  ;;  %v2628_v54 = vld [vmem:[#allocation18_spill] sm:$0xff]  ;;  %v2630_v19 = vld [vmem:[#allocation21_spill] sm:$0xff] }
 0x445   :  { %v1348_v46 = vadd.f32 %v1332_v17, %v658_v57  ;;  %v1362_v41 = vadd.f32 %v1361_v47, %v1347_v16  ;;  %v1222_v25 = vmax.f32 %v1168_v18, 0.0  ;;  %v1335_v24 = vmul.f32 %v2552_v37, %v1223_v3  ;;  %v1207_v43 = vpop.f32.mrf.mxu1  ;;  %v1069_v53 = vpop.permute.xlu0 %1068  ;;  %v2626_v57 = vld [vmem:[#allocation19_spill] sm:$0xff]  ;;  %v2627_v47 = vld [vmem:[#allocation12_spill] sm:$0xff] }
 0x446   :  { %v1227_v37 = vmax.f32 %v1193_v28, 0.0  ;;  %v1352_v10 = vadd.f32 %v1336_v48, %v662_v51  ;;  %v1338_v32 = vmul.f32 %v1301_v38, %v1226_v6  ;;  %v1228_v31 = vmax.f32 %v1198_v29, 0.0  ;;  %v2629_v2 = vld [vmem:[#allocation15_spill] sm:$0xff]  ;;  %v2631_v28 = vld [vmem:[#allocation14_spill] sm:$0xff] }
 0x447   :  { %v1363_v0 = vadd.f32 %v1362_v41, %v1348_v46  ;;  %v1334_v20 = vmul.f32 %v2550_v36, %v1222_v25  ;;  %v1351_v36 = vadd.f32 %v1335_v24, %v661_v8  ;;  %v1208_v39 = vadd.f32 %v1207_v43, %v1064_v1  ;;  %v1316_v22 = vpop.permute.xlu1 %1315 }
 0x448   :  { %v664_v45 = vmul.f32 %v2622_v44, %v2203_v55  ;;  %v1353_v15 = vadd.f32 %v1337_v42, %v663_v50  ;;  %v1339_v62 = vmul.f32 %v1306_v5, %v1227_v37  ;;  %v1229_v9 = vmax.f32 %v1203_v4, 0.0 }
 0x449   :  { %v1350_v60 = vadd.f32 %v1334_v20, %v660_v49  ;;  %v1364_v12 = vadd.f32 %v1363_v0, %v1349_v33  ;;  %v1213_v63 = vadd.f32 %v1828_v21, %v1069_v53  ;;  %v665_v59 = vmul.f32 %v2624_v27, %v2623_v34  ;;  %v1321_v40 = vpop.permute.xlu0 %1320  ;;  %v2632_v21 = vld [vmem:[#allocation20_spill] sm:$0xff] }
 0x44a   :  { %v1354_v13 = vadd.f32 %v1338_v32, %v664_v45  ;;  %v1340_v52 = vmul.f32 %v1311_v11, %v1228_v31  ;;  %v1230_v38 = vmax.f32 %v1208_v39, 0.0  ;;  %v666_v56 = vmul.f32 %v2626_v57, %v2625_v23 }
 0x44b   :  { %v1365_v61 = vadd.f32 %v1364_v12, %v1350_v60  ;;  %v1355_v26 = vadd.f32 %v1339_v62, %v665_v59  ;;  %v1341_v16 = vmul.f32 %v1316_v22, %v1229_v9  ;;  %v1231_v55 = vmax.f32 %v1213_v63, 0.0  ;;  %v1326_v46 = vpop.permute.xlu1 %1325 }
 0x44c   :  { %v667_v3 = vmul.f32 %v2628_v54, %v2627_v47  ;;  %v1356_v18 = vadd.f32 %v1340_v52, %v666_v56  ;;  %v1342_v5 = vmul.f32 %v1321_v40, %v1230_v38  ;;  %v668_v41 = vmul.f32 %v2630_v19, %v2629_v2 }
 0x44d   :  { %v1366_v30 = vadd.f32 %v1365_v61, %v1351_v36  ;;  %v1343_v49 = vmul.f32 %v1326_v46, %v1231_v55  ;;  %v669_v33 = vmul.f32 %v2632_v21, %v2631_v28 }
 0x44e   :  { %v1357_v25 = vadd.f32 %v1341_v16, %v667_v3  ;;  %v1358_v0 = vadd.f32 %v1342_v5, %v668_v41 }
 0x44f   :  { %v1367_v58 = vadd.f32 %v1366_v30, %v1352_v10  ;;  %v1359_v20 = vadd.f32 %v1343_v49, %v669_v33 }
 0x451   :  { %v1368_v14 = vadd.f32 %v1367_v58, %v1353_v15 }
 0x453   :  { %v1369_v17 = vadd.f32 %v1368_v14, %v1354_v13 }
 0x455   :  { %v1370_v35 = vadd.f32 %v1369_v17, %v1355_v26 }
 0x457   :  { %v1371_v7 = vadd.f32 %v1370_v35, %v1356_v18 }
 0x459   :  { %v1372_v24 = vadd.f32 %v1371_v7, %v1357_v25 }
 0x45b   :  { %v1373_v8 = vadd.f32 %v1372_v24, %v1358_v0 }
 0x45d   :  { %v1374_v1 = vadd.f32 %v1373_v8, %v1359_v20 }
 0x45f   :  { %v1375_v48 = vrot.slane %v1374_v1, 4 }
 0x461   :  { %v1376_v6 = vadd.f32 %v1375_v48, %v1374_v1 }
 0x463   :  { %v1377_v29 = vrot.slane %v1376_v6, 2 }
 0x465   :  { %v1378_v60 = vadd.f32 %v1377_v29, %v1376_v6 }
 0x467   :  { %v1379_v12 = vrot.slane %v1378_v60, 1 }
 0x469   :  { %v1380_v51 = vadd.f32 %v1379_v12, %v1378_v60 }
 0x46b   :  { %v1436_v11 = vmul.f32 -1.442695, %v1380_v51 }
 0x46d   :  { %1870 = vpow2.f32 %v1436_v11 }
 0x47a   :  { %v1871_v42 = vpop.eup %1870 }
 0x47b   :  { %v1384_v43 = vadd.f32 1.0, %v1871_v42 }
 0x47d   :  { %1872 = vrcp.f32 %v1384_v43 }
 0x48a   :  { %v1873_v37 = vpop.eup %1872 }
 0x48b   :  { %1387 = vst [vmem:[#allocation7] sm:$0x1] %v1873_v37 }
 0x48c   :  { %1925 = shalt.err (!%p1922_p0)
}
 0x48d   :  { %1397 = dma.vmem_to_hbm [thread:$0]  %s1395_s19, 16, %s2605_s8, [#allocation4]  }
 0x48e   :  { %1938 = dma.done.wait [#allocation4], 16  }
 0x48f   :  { %1939 = vsyncadd [#allocation4], 4294967280 }
 0x490   :  { %1401 = vsyncpa [#allocation3], 1 }
 0x491   :  { %1402 = vsyncpa [#allocation6], 1 }
 0x492   :  { %1403 = vsyncpa [#allocation4], 1 }

</bundles_post_ra>
